<compile_context>
chip_gen: v7x
topology: tpu7x:2x2x1
jax: 0.10.0
libtpu: 0.0.40
codegen_flags: <defaults>
</compile_context>

<pallas_src>
import functools

import numpy as np
import jax
import jax.numpy as jnp
from jax.experimental import pallas as pl
from jax.experimental.pallas import tpu as pltpu

H_IN, W_IN = 345, 456
H_OUT, W_OUT = 224, 224
# Exact scale constants from the captured graph.
SCALE_H = 1.5401785714285714     # 345 / 224
SCALE_W = 2.0357142857142856     # 456 / 224


# ---------------------------------------------------------------------------
# Host-side (numpy) weight construction — mirrors the graph's index/weight
# math in float32, producing dense 2-tap interpolation matrices.
# ---------------------------------------------------------------------------
def _interp_params_np(out_size, in_size, scale):
    i = np.arange(out_size, dtype=np.float32)
    src = np.maximum((i + np.float32(0.5)) * np.float32(scale) - np.float32(0.5),
                     np.float32(0.0))                      # clamp_min
    lo = src.astype(np.int32)                              # trunc == floor (src >= 0)
    hi = np.minimum(np.ceil(src), np.float32(in_size - 1)).astype(np.int32)
    frac = (src - lo.astype(np.float32)).astype(np.float32)
    return lo, hi, frac


def _make_interp_matrix_np(out_size, in_size, scale):
    """(out_size, in_size) f32 matrix with the 2-tap linear weights per row."""
    lo, hi, frac = _interp_params_np(out_size, in_size, scale)
    w = np.zeros((out_size, in_size), np.float32)
    rows = np.arange(out_size)
    np.add.at(w, (rows, lo), np.float32(1.0) - frac)       # handles lo == hi
    np.add.at(w, (rows, hi), frac)
    return w


@functools.lru_cache(maxsize=1)
def _get_weights_np():
    """Compile-time constant weight matrices (numpy).

    wh : (H_OUT, H_IN)  vertical 2-tap weights.
    wwt: (W_IN, W_OUT)  horizontal 2-tap weights, transposed so the W pass is
                        a plain (H_IN, W_IN) @ (W_IN, W_OUT) matmul.
    """
    wh = _make_interp_matrix_np(H_OUT, H_IN, SCALE_H)              # (224, 345)
    ww = _make_interp_matrix_np(W_OUT, W_IN, SCALE_W)              # (224, 456)
    return wh, np.ascontiguousarray(ww.T)                          # (456, 224)


# ---------------------------------------------------------------------------
# Pallas kernel: one grid step = one channel (two small matmuls).
# ---------------------------------------------------------------------------
def _bilinear_kernel(wwt_ref, wh_ref, x_ref, o_ref):
    # wwt_ref : (W_IN, W_OUT)   resident (constant index_map)
    # wh_ref  : (H_OUT, H_IN)   resident (constant index_map)
    # x_ref   : (H_IN, W_IN)    channel c of the input image
    # o_ref   : (H_OUT, W_OUT)  channel c of the output
    a = jnp.dot(x_ref[...], wwt_ref[...],
                preferred_element_type=jnp.float32)                # (H_IN, W_OUT)
    o_ref[...] = jnp.dot(wh_ref[...], a,
                         preferred_element_type=jnp.float32)       # (H_OUT, W_OUT)


@functools.partial(jax.jit, static_argnames=())
def bilinear_resize(x):
    """x: (C, H_IN, W_IN) float32 -> (1, C, H_OUT, W_OUT) float32."""
    C = x.shape[0]
    wh_np, wwt_np = _get_weights_np()
    wh = jnp.asarray(wh_np)
    wwt = jnp.asarray(wwt_np)

    out = pl.pallas_call(
        _bilinear_kernel,
        out_shape=jax.ShapeDtypeStruct((C, H_OUT, W_OUT), jnp.float32),
        grid=(C,),
        in_specs=[
            # Weights: same block every step -> DMA'd once, stay VMEM-resident.
            pl.BlockSpec((W_IN, W_OUT), lambda c: (0, 0)),
            pl.BlockSpec((H_OUT, H_IN), lambda c: (0, 0)),
            # One channel of the image per grid step (leading dim squeezed).
            pl.BlockSpec((None, H_IN, W_IN), lambda c: (c, 0, 0)),
        ],
        out_specs=pl.BlockSpec((None, H_OUT, W_OUT), lambda c: (c, 0, 0)),
        compiler_params=pltpu.CompilerParams(
            # Channels are independent: pipeline them and shard across the two
            # TensorCores on v7x (no-op on single-TC v5e/v6e).
            dimension_semantics=("parallel",),
        ),
    )(wwt, wh, x)

    # unsqueeze(0): pure metadata reshape, no extra HBM pass.
    return out[None]                                               # (1, C, 224, 224)


# ---------------------------------------------------------------------------
# Pure-JAX reference mirroring the aten graph op-by-op.
# ---------------------------------------------------------------------------
def _interp_params_ref(out_size, in_size, scale):
    i = jnp.arange(out_size, dtype=jnp.float32)
    src = jnp.maximum((i + 0.5) * scale - 0.5, 0.0)
    lo = src.astype(jnp.int32)
    hi = jnp.minimum(jnp.ceil(src), float(in_size - 1)).astype(jnp.int32)
    frac = src - lo.astype(jnp.float32)
    return lo, hi, frac


def _reference(x):
    x4 = x[None]                                                   # (1, C, H, W)
    h_lo, h_hi, dh = _interp_params_ref(H_OUT, H_IN, SCALE_H)
    w_lo, w_hi, dw = _interp_params_ref(W_OUT, W_IN, SCALE_W)
    v00 = x4[:, :, h_lo[:, None], w_lo[None, :]]
    v10 = x4[:, :, h_hi[:, None], w_lo[None, :]]
    v01 = x4[:, :, h_lo[:, None], w_hi[None, :]]
    v11 = x4[:, :, h_hi[:, None], w_hi[None, :]]
    dh2 = dh[:, None]
    top = v00 * (1.0 - dh2) + v10 * dh2
    bot = v01 * (1.0 - dh2) + v11 * dh2
    return top * (1.0 - dw) + bot * dw


if __name__ == "__main__":
    key = jax.random.PRNGKey(0)
    C = 3                                                          # small channel count
    x = jax.random.normal(key, (C, H_IN, W_IN), dtype=jnp.float32)

    out = bilinear_resize(x)
    out = jax.block_until_ready(out)

    ref = _reference(x)
    assert out.shape == (1, C, H_OUT, W_OUT), out.shape
    assert jnp.allclose(out, ref, atol=1e-4, rtol=1e-4), float(
        jnp.max(jnp.abs(out - ref))
    )
    print("KERNEL_OK")
</pallas_src>

<mosaic_0001>
module attributes {stable_mosaic.version = 11 : i64} {
  func.func @_bilinear_kernel(%arg0: i32, %arg1: memref<456x224xf32, #tpu.memory_space<vmem>>, %arg2: memref<224x345xf32, #tpu.memory_space<vmem>>, %arg3: memref<1x345x456xf32, #tpu.memory_space<vmem>>, %arg4: memref<1x224x224xf32, #tpu.memory_space<vmem>>) attributes {dimension_semantics = [#tpu.dimension_semantics<parallel>], iteration_bounds = array<i64: 3>, scalar_prefetch = 0 : i64, scratch_operands = 0 : i64, tpu.core_type = #tpu.core_type<tc>, window_params = [{pipeline_mode = #tpu.pipeline_mode<synchronous>, transform_indices = @transform_0, window_bounds = array<i64: 456, 224>}, {pipeline_mode = #tpu.pipeline_mode<synchronous>, transform_indices = @transform_1, window_bounds = array<i64: 224, 345>}, {transform_indices = @transform_2, window_bounds = array<i64: 1, 345, 456>}, {transform_indices = @transform_3, window_bounds = array<i64: 1, 224, 224>}]} {
    %c0 = arith.constant 0 : index
    %c0_0 = arith.constant 0 : index
    %c0_1 = arith.constant 0 : index
    %0 = vector.load %arg3[%c0, %c0_0, %c0_1] : memref<1x345x456xf32, #tpu.memory_space<vmem>>, vector<1x345x456xf32>
    %1 = vector.shape_cast %0 : vector<1x345x456xf32> to vector<345x456xf32>
    %c0_2 = arith.constant 0 : index
    %c0_3 = arith.constant 0 : index
    %2 = vector.load %arg1[%c0_2, %c0_3] : memref<456x224xf32, #tpu.memory_space<vmem>>, vector<456x224xf32>
    %cst = arith.constant dense<0.000000e+00> : vector<345x224xf32>
    %3 = tpu.matmul %1, %2, %cst {dimension_numbers = #tpu.dot_dimension_numbers<[1], [0], [0], [1], [0, 0, 1, 1], [], []>} : vector<345x456xf32>, vector<456x224xf32>, vector<345x224xf32> -> vector<345x224xf32>
    %c0_4 = arith.constant 0 : index
    %c0_5 = arith.constant 0 : index
    %4 = vector.load %arg2[%c0_4, %c0_5] : memref<224x345xf32, #tpu.memory_space<vmem>>, vector<224x345xf32>
    %cst_6 = arith.constant dense<0.000000e+00> : vector<224x224xf32>
    %5 = tpu.matmul %4, %3, %cst_6 {dimension_numbers = #tpu.dot_dimension_numbers<[1], [0], [0], [1], [0, 0, 1, 1], [], []>} : vector<224x345xf32>, vector<345x224xf32>, vector<224x224xf32> -> vector<224x224xf32>
    %c0_7 = arith.constant 0 : index
    %c0_8 = arith.constant 0 : index
    %c0_9 = arith.constant 0 : index
    %6 = vector.load %arg4[%c0_7, %c0_8, %c0_9] : memref<1x224x224xf32, #tpu.memory_space<vmem>>, vector<1x224x224xf32>
    %7 = vector.shape_cast %6 : vector<1x224x224xf32> to vector<224x224xf32>
    %8 = vector.shape_cast %5 : vector<224x224xf32> to vector<1x224x224xf32>
    tpu.vector_store %arg4[%c0_7, %c0_8, %c0_9], %8 {strides = array<i32>} : memref<1x224x224xf32, #tpu.memory_space<vmem>>, vector<1x224x224xf32>,
    return
  }
  func.func @transform_0(%arg0: i32) -> (i32, i32) {
    %c0_i32 = arith.constant 0 : i32
    %c0_i32_0 = arith.constant 0 : i32
    %c0_i32_1 = arith.constant 0 : i32
    return %c0_i32, %c0_i32_0 : i32, i32
  }
  func.func @transform_1(%arg0: i32) -> (i32, i32) {
    %c0_i32 = arith.constant 0 : i32
    %c0_i32_0 = arith.constant 0 : i32
    %c0_i32_1 = arith.constant 0 : i32
    return %c0_i32, %c0_i32_0 : i32, i32
  }
  func.func @transform_2(%arg0: i32) -> (i32, i32, i32) {
    %c0_i32 = arith.constant 0 : i32
    %c0_i32_0 = arith.constant 0 : i32
    %c0_i32_1 = arith.constant 0 : i32
    return %arg0, %c0_i32, %c0_i32_0 : i32, i32, i32
  }
  func.func @transform_3(%arg0: i32) -> (i32, i32, i32) {
    %c0_i32 = arith.constant 0 : i32
    %c0_i32_0 = arith.constant 0 : i32
    %c0_i32_1 = arith.constant 0 : i32
    return %arg0, %c0_i32, %c0_i32_0 : i32, i32, i32
  }
}

</mosaic_0001>

<bundles_post_ra>
// kernel: bilinear_resize.1
= control target key start
LH: loop header
LB: loop body
LE: loop exit
PB: predicated region body
PF: predicated region fallthrough
CT: control target
= control target key end

     0   :  { %8 = vsyncpa [#allocation3], 0  ;;  %s4036_s0 = inlined_call_operand.vmem [shape: f32[456,224], index: 0, kind: input, shape index: {}]   ;;  %s4037_s1 = inlined_call_operand.vmem [shape: f32[224,345], index: 1, kind: input, shape index: {}]   ;;  %s4038_s2 = inlined_call_operand.vmem [shape: f32[3,345,456], index: 2, kind: input, shape index: {}]   ;;  %s4039_s3 = inlined_call_operand.hbm [shape: f32[3,224,224], index: 3, kind: output, shape index: {}]  }
   0x1   :  { %10 = vsyncpa [#allocation3 + $0x1], 0  ;;  %s2614_s12 = smov 0   ;;  %s2616_s13 = smov 0  }
   0x2   :  { %s2618_s14 = smov 0   ;;  %s2620_s15 = smov 0  }
   0x3 LB: > { %s2635_s16 = sadd.s32 4294967295, %s2587_s15   ;;  %s2025_s17 = sadd.s32 4294967294, %s2587_s15   ;;  %s2587_s15 = sphi %s2620_s15, %s4050_s15   ;;  %s2583_s14 = sphi %s2618_s14, %s4049_s14   ;;  %s2579_s13 = sphi %s2616_s13, %s4048_s13   ;;  %s2575_s12 = sphi %s2614_s12, %s4047_s12  }
   0x4   : > { %s2639_s18 = sadd.s32 1, %s2587_s15   ;;  %s91_s19 = sadd.s32 1, %s2583_s14 }
   0x5   : > { %s88_s20 = ssub.s32 %s2587_s15, %s2639_s18  ;;  %p101_p0 = scmp.ne.s32.totalorder %s2583_s14, %s2579_s13 }
   0x6   : > { %p89_p1 = scmp.eq.s32.totalorder %s88_s20, 0  ;;  %p102_p2 = scmp.eq.s32.totalorder %s2635_s16, 2 }
   0x7   : > { %p107_p3 = scmp.ne.s32.totalorder %s2579_s13, %s2575_s12  ;;  %p108_p4 = scmp.eq.s32.totalorder %s2025_s17, 2 }
   0x8   : > { %s2650_s21 = scalar_select %p89_p1, %s2583_s14, %s91_s19  }
   0x9   : > { %p2652_p5 = por %p102_p2, %p101_p0  ;;  %p2656_p6 = por %p108_p4, %p107_p3 }
   0xa   : > { %p2028_p7 = scmp.ge.s32.totalorder %s2587_s15, 1  ;;  %p140_p8 = scmp.lt.s32.totalorder %s2587_s15, 4 }
   0xc   : > { %p141_p9 = pnand %p2028_p7, %p140_p8 }
   0xd   : > { %v346_v0 = vld [vmem:[%s4036_s0 + $0x8] sm:$0xff] (!%p141_p9)  ;;  %v348_v1 = vld [vmem:[%s4036_s0 + $0x18] sm:$0xff] (!%p141_p9)  ;;  %v345_v2 = vld [vmem:[%s4036_s0] sm:$0xff] (!%p141_p9)  ;;  %p164_p10 = scmp.lt.s32.totalorder (!%p141_p9), %s2635_s16, 2  ;;  %vm459_vm0 = vcmask (!%p141_p9), 588800   ;;  %vm1419_vm1 = vcmask (!%p141_p9), 1040384  }
   0xe   : > { %144 = sbr.rel (%p141_p9) target bundleno = 1035 (0x40b), region = 32  ;;  %v2107_v3 = vpack.c.bf16 (!%p141_p9), %v348_v1, %v346_v0  ;;  %v347_v4 = vld [vmem:[%s4036_s0 + $0x10] sm:$0xff] (!%p141_p9)  ;;  %v350_v5 = vld [vmem:[%s4036_s0 + $0x28] sm:$0xff] (!%p141_p9)  ;;  %v352_v6 = vld [vmem:[%s4036_s0 + $0x38] sm:$0xff] (!%p141_p9)  ;;  %vm2589_vm2 = vmmov (!%p141_p9), 1   ;;  %vm1334_vm4 = vcmask (!%p141_p9), 728064  }
   0xf   : > { %v2109_v7 = vpack.c.bf16 (!%p141_p9), %v347_v4, %v345_v2  ;;  %v2111_v8 = vpack.c.bf16 (!%p141_p9), %v352_v6, %v350_v5  ;;  %v349_v9 = vld [vmem:[%s4036_s0 + $0x20] sm:$0xff] (!%p141_p9)  ;;  %v351_v10 = vld [vmem:[%s4036_s0 + $0x30] sm:$0xff] (!%p141_p9)  ;;  %v354_v11 = vld [vmem:[%s4036_s0 + $0x48] sm:$0xff] (!%p141_p9)  ;;  %s161_s11 = sand.u32 (!%p141_p9), 1, %s2579_s13   ;;  %vm1893_vm5 = vcmask (!%p141_p9), 785408   ;;  %s2481_s20 = smul.u32 (!%p141_p9), 7168, %s2635_s16 }
  0x10   : > { %2108 = vmatprep.subr.bf16.mxu0 (!%p141_p9), %v2107_v3  ;;  %v356_v12 = vld [vmem:[%s4036_s0 + $0x58] sm:$0xff] (!%p141_p9)  ;;  %v2113_v13 = vpack.c.bf16 (!%p141_p9), %v351_v10, %v349_v9  ;;  %v353_v15 = vld [vmem:[%s4036_s0 + $0x40] sm:$0xff] (!%p141_p9)  ;;  %v355_v16 = vld [vmem:[%s4036_s0 + $0x50] sm:$0xff] (!%p141_p9)  ;;  %s2479_s17 = smul.u32 (!%p141_p9), 448, %s161_s11  ;;  %s2591_s30 = smov (!%p141_p9), [#allocation2]  }
  0x11   : > { %2110 = vmatpush1.bf16.msra.mxu0 (!%p141_p9), %v2109_v7  ;;  %v2115_v14 = vpack.c.bf16 (!%p141_p9), %v356_v12, %v354_v11  ;;  %v358_v17 = vld [vmem:[%s4036_s0 + $0x68] sm:$0xff] (!%p141_p9)  ;;  %v360_v18 = vld [vmem:[%s4036_s0 + $0x78] sm:$0xff] (!%p141_p9)  ;;  %v2117_v19 = vpack.c.bf16 (!%p141_p9), %v355_v16, %v353_v15  ;;  %v357_v21 = vld [vmem:[%s4036_s0 + $0x60] sm:$0xff] (!%p141_p9)  ;;  %s3986_s28 = scalar_lea.hbm (!%p141_p9), %s4039_s3, %s2481_s20  ;;  %s2529_s4 = sshll.u32 (!%p141_p9), %s2591_s30, 4  ;;  %s2530_s4 = int_to_ptr.vmem [resolvable:$false] %s2529_s4 }
  0x12   : > { %2112 = vmatprep.subr.bf16.mxu0 (!%p141_p9), %v2111_v8  ;;  %v2119_v20 = vpack.c.bf16 (!%p141_p9), %v360_v18, %v358_v17  ;;  %v359_v22 = vld [vmem:[%s4036_s0 + $0x70] sm:$0xff] (!%p141_p9)  ;;  %v362_v23 = vld [vmem:[%s4036_s0 + $0x88] sm:$0xff] (!%p141_p9)  ;;  %v364_v24 = vld [vmem:[%s4036_s0 + $0x98] sm:$0xff] (!%p141_p9)  ;;  %s3898_s19 = scalar_lea.vmem (!%p141_p9), [#allocation2], %s2479_s17  ;;  %s2531_s5 = scalar_lea.vmem (!%p141_p9), %s2530_s4, 14336 }
  0x13   : > { %v2121_v25 = vpack.c.bf16 (!%p141_p9), %v359_v22, %v357_v21  ;;  %v2123_v26 = vpack.c.bf16 (!%p141_p9), %v364_v24, %v362_v23  ;;  %v361_v27 = vld [vmem:[%s4036_s0 + $0x80] sm:$0xff] (!%p141_p9)  ;;  %v363_v28 = vld [vmem:[%s4036_s0 + $0x90] sm:$0xff] (!%p141_p9)  ;;  %v366_v29 = vld [vmem:[%s4036_s0 + $0xa8] sm:$0xff] (!%p141_p9) }
  0x14   : > { %v368_v30 = vld [vmem:[%s4036_s0 + $0xb8] sm:$0xff] (!%p141_p9)  ;;  %v2125_v31 = vpack.c.bf16 (!%p141_p9), %v363_v28, %v361_v27  ;;  %v365_v33 = vld [vmem:[%s4036_s0 + $0xa0] sm:$0xff] (!%p141_p9)  ;;  %v367_v34 = vld [vmem:[%s4036_s0 + $0xb0] sm:$0xff] (!%p141_p9) }
  0x15   : > { %2114 = vmatpush1.bf16.msra.mxu0 %v2113_v13  ;;  %s165_s24 = scalar_select %p164_p10, %s2635_s16, 2  ;;  %v2127_v32 = vpack.c.bf16 %v368_v30, %v366_v29  ;;  %v370_v35 = vld [vmem:[%s4036_s0 + $0xc8] sm:$0xff]  ;;  %v372_v36 = vld [vmem:[%s4036_s0 + $0xd8] sm:$0xff]  ;;  %v2129_v37 = vpack.c.bf16 %v367_v34, %v365_v33  ;;  %v369_v38 = vld [vmem:[%s4036_s0 + $0xc0] sm:$0xff] }
  0x16   : > { %2116 = vmatprep.subr.bf16.mxu0 %v2115_v14  ;;  %v371_v39 = vld [vmem:[%s4036_s0 + $0xd0] sm:$0xff]  ;;  %v2131_v40 = vpack.c.bf16 %v372_v36, %v370_v35  ;;  %v374_v41 = vld [vmem:[%s4036_s0 + $0xe8] sm:$0xff]  ;;  %v376_v42 = vld [vmem:[%s4036_s0 + $0xf8] sm:$0xff]  ;;  %s3995_s16 = scalar_lea.sflag [#allocation3], %s161_s11 }
  0x17   : > { %s2480_s6 = smul.u32 1408, %s165_s24  ;;  %v410_v44 = vld [vmem:[%s4036_s0 + $0x208] sm:$0xff]  ;;  %v412_v45 = vld [vmem:[%s4036_s0 + $0x218] sm:$0xff]  ;;  %v409_v46 = vld [vmem:[%s4036_s0 + $0x200] sm:$0xff]  ;;  %v2133_v49 = vpack.c.bf16 %v371_v39, %v369_v38  ;;  %v2135_v52 = vpack.c.bf16 %v376_v42, %v374_v41  ;;  %s1963_s24 = sshll.u32 %s3898_s19, 4  ;;  %s3988_s24 = int_to_ptr.vmem [resolvable:$true] %s1963_s24 }
  0x18   : > { %v2769_v47 = vpack.c.bf16 %v412_v45, %v410_v44  ;;  %v411_v48 = vld [vmem:[%s4036_s0 + $0x210] sm:$0xff]  ;;  %v373_v50 = vld [vmem:[%s4036_s0 + $0xe0] sm:$0xff]  ;;  %v378_v54 = vld [vmem:[%s4036_s0 + $0x108] sm:$0xff]  ;;  %s2525_s29 = scalar_lea.vmem %s3988_s24, 7168  ;;  %p2532_p0 = scmp.lt.s32.totalorder %s3988_s24, %s2530_s4 }
  0x19   : > { %2118 = vmatpush1.bf16.msra.mxu0 %v2117_v19  ;;  %s2745_s26 = scalar_lea.vmem %s4038_s2, %s2480_s6  ;;  %v2777_v51 = vpack.c.bf16 %v411_v48, %v409_v46  ;;  %v375_v53 = vld [vmem:[%s4036_s0 + $0xf0] sm:$0xff]  ;;  %v414_v55 = vld [vmem:[%s4036_s0 + $0x228] sm:$0xff]  ;;  %v380_v56 = vld [vmem:[%s4036_s0 + $0x118] sm:$0xff]  ;;  %p2526_p11 = scmp.ne.s32.totalorder %s3988_s24, %s2525_s29 }
  0x1a   : > { %2120 = vmatprep.subr.bf16.mxu0 %v2119_v20  ;;  %v170_v43 = vld [vmem:[%s2745_s26 + $0x8] sm:$0xff]  ;;  %2309 = vmatprep.subr.bf16.mxu1 %v2769_v47  ;;  %v416_v57 = vld [vmem:[%s4036_s0 + $0x238] sm:$0xff]  ;;  %v413_v58 = vld [vmem:[%s4036_s0 + $0x220] sm:$0xff]  ;;  %v2137_v61 = vpack.c.bf16 %v375_v53, %v373_v50  ;;  %v2139_v1 = vpack.c.bf16 %v380_v56, %v378_v54  ;;  %p2533_p1 = scmp.lt.s32.totalorder %s2531_s5, %s2525_s29 }
  0x1b   : > { %656 = vmatprep.mubr.f32.mxu0 %v170_v43  ;;  %2322 = vmatpush1.bf16.msra.mxu1 %v2777_v51  ;;  %v2799_v59 = vpack.c.bf16 %v416_v57, %v414_v55  ;;  %v415_v60 = vld [vmem:[%s4036_s0 + $0x230] sm:$0xff]  ;;  %v377_v62 = vld [vmem:[%s4036_s0 + $0x100] sm:$0xff]  ;;  %v382_v2 = vld [vmem:[%s4036_s0 + $0x128] sm:$0xff]  ;;  %p2527_p12 = pnand %p2526_p11, %p2652_p5 }
  0x1c   : > { %v379_v63 = vld [vmem:[%s4036_s0 + $0x110] sm:$0xff]  ;;  %v2810_v0 = vpack.c.bf16 %v415_v60, %v413_v58  ;;  %v418_v3 = vld [vmem:[%s4036_s0 + $0x248] sm:$0xff]  ;;  %v420_v4 = vld [vmem:[%s4036_s0 + $0x258] sm:$0xff]  ;;  %p2534_p2 = por %p2533_p1, %p2532_p0 }
  0x1d   : > { %2122 = vmatpush1.bf16.msra.mxu0 %v2121_v25  ;;  %2310 = vmatprep.subr.bf16.mxu1 %v2799_v59  ;;  %v384_v5 = vld [vmem:[%s4036_s0 + $0x138] sm:$0xff]  ;;  %v2825_v6 = vpack.c.bf16 %v420_v4, %v418_v3  ;;  %v417_v7 = vld [vmem:[%s4036_s0 + $0x240] sm:$0xff]  ;;  %v419_v8 = vld [vmem:[%s4036_s0 + $0x250] sm:$0xff]  ;;  %v2141_v10 = vpack.c.bf16 %v379_v63, %v377_v62  ;;  %p2528_p13 = pneg %p2527_p12 }
  0x1e   : > { %2124 = vmatprep.subr.bf16.mxu0 %v2123_v26  ;;  %v2834_v9 = vpack.c.bf16 %v419_v8, %v417_v7  ;;  %v381_v11 = vld [vmem:[%s4036_s0 + $0x120] sm:$0xff]  ;;  %v422_v12 = vld [vmem:[%s4036_s0 + $0x268] sm:$0xff]  ;;  %v2143_v13 = vpack.c.bf16 %v384_v5, %v382_v2  ;;  %v383_v14 = vld [vmem:[%s4036_s0 + $0x130] sm:$0xff] }
  0x1f   : > { %2323 = vmatpush1.bf16.msra.mxu1 %v2810_v0  ;;  %v424_v15 = vld [vmem:[%s4036_s0 + $0x278] sm:$0xff]  ;;  %v421_v16 = vld [vmem:[%s4036_s0 + $0x260] sm:$0xff]  ;;  %v386_v17 = vld [vmem:[%s4036_s0 + $0x148] sm:$0xff]  ;;  %v2145_v22 = vpack.c.bf16 %v383_v14, %v381_v11  ;;  %p2535_p3 = pnand %p2534_p2, %p2528_p13 }
  0x20   : > { %2311 = vmatprep.subr.bf16.mxu1 %v2825_v6  ;;  %v388_v18 = vld [vmem:[%s4036_s0 + $0x158] sm:$0xff]  ;;  %v2858_v19 = vpack.c.bf16 %v424_v15, %v422_v12  ;;  %v423_v20 = vld [vmem:[%s4036_s0 + $0x270] sm:$0xff]  ;;  %v385_v23 = vld [vmem:[%s4036_s0 + $0x140] sm:$0xff] }
  0x21   : > { %2126 = vmatpush1.bf16.msra.mxu0 %v2125_v31  ;;  %v2864_v21 = vpack.c.bf16 %v423_v20, %v421_v16  ;;  %v387_v24 = vld [vmem:[%s4036_s0 + $0x150] sm:$0xff]  ;;  %v426_v25 = vld [vmem:[%s4036_s0 + $0x288] sm:$0xff]  ;;  %v2147_v26 = vpack.c.bf16 %v388_v18, %v386_v17  ;;  %v428_v27 = vld [vmem:[%s4036_s0 + $0x298] sm:$0xff] }
  0x22   : > { %2128 = vmatprep.subr.bf16.mxu0 %v2127_v32  ;;  %v425_v28 = vld [vmem:[%s4036_s0 + $0x280] sm:$0xff]  ;;  %v427_v29 = vld [vmem:[%s4036_s0 + $0x290] sm:$0xff]  ;;  %v390_v30 = vld [vmem:[%s4036_s0 + $0x168] sm:$0xff]  ;;  %v2891_v32 = vpack.c.bf16 %v428_v27, %v426_v25  ;;  %v2149_v34 = vpack.c.bf16 %v387_v24, %v385_v23 }
  0x23   : > { %2324 = vmatpush1.bf16.msra.mxu1 %v2834_v9  ;;  %v392_v31 = vld [vmem:[%s4036_s0 + $0x178] sm:$0xff]  ;;  %v2893_v33 = vpack.c.bf16 %v427_v29, %v425_v28  ;;  %v430_v35 = vld [vmem:[%s4036_s0 + $0x2a8] sm:$0xff]  ;;  %v389_v39 = vld [vmem:[%s4036_s0 + $0x160] sm:$0xff] }
  0x24   : > { %2312 = vmatprep.subr.bf16.mxu1 %v2858_v19  ;;  %v432_v36 = vld [vmem:[%s4036_s0 + $0x2b8] sm:$0xff]  ;;  %v2151_v38 = vpack.c.bf16 %v392_v31, %v390_v30  ;;  %v431_v42 = vld [vmem:[%s4036_s0 + $0x2b0] sm:$0xff]  ;;  %v394_v43 = vld [vmem:[%s4036_s0 + $0x188] sm:$0xff] }
  0x25   : > { %2130 = vmatpush1.bf16.msra.mxu0 %v2129_v37  ;;  %v429_v37 = vld [vmem:[%s4036_s0 + $0x2a0] sm:$0xff]  ;;  %v2912_v41 = vpack.c.bf16 %v432_v36, %v430_v35  ;;  %v396_v44 = vld [vmem:[%s4036_s0 + $0x198] sm:$0xff]  ;;  %v434_v46 = vld [vmem:[%s4036_s0 + $0x2c8] sm:$0xff] }
  0x26   : > { %2132 = vmatprep.subr.bf16.mxu0 %v2131_v40  ;;  %v391_v40 = vld [vmem:[%s4036_s0 + $0x170] sm:$0xff]  ;;  %v2923_v45 = vpack.c.bf16 %v431_v42, %v429_v37  ;;  %v436_v48 = vld [vmem:[%s4036_s0 + $0x2d8] sm:$0xff]  ;;  %v393_v50 = vld [vmem:[%s4036_s0 + $0x180] sm:$0xff]  ;;  %v2155_v55 = vpack.c.bf16 %v396_v44, %v394_v43 }
  0x27   : > { %2325 = vmatpush1.bf16.msra.mxu1 %v2864_v21  ;;  %v433_v53 = vld [vmem:[%s4036_s0 + $0x2c0] sm:$0xff]  ;;  %v435_v54 = vld [vmem:[%s4036_s0 + $0x2d0] sm:$0xff]  ;;  %v438_v57 = vld [vmem:[%s4036_s0 + $0x2e8] sm:$0xff] }
  0x28   : > { %2313 = vmatprep.subr.bf16.mxu1 %v2891_v32  ;;  %v395_v56 = vld [vmem:[%s4036_s0 + $0x190] sm:$0xff]  ;;  %v440_v58 = vld [vmem:[%s4036_s0 + $0x2f8] sm:$0xff]  ;;  %v398_v60 = vld [vmem:[%s4036_s0 + $0x1a8] sm:$0xff]  ;;  %v2960_v62 = vpack.c.bf16 %v435_v54, %v433_v53 }
  0x29   : > { %2134 = vmatpush1.bf16.msra.mxu0 %v2133_v49  ;;  %v2153_v49 = vpack.c.bf16 %v391_v40, %v389_v39  ;;  %v2963_v63 = vpack.c.bf16 %v440_v58, %v438_v57  ;;  %v439_v2 = vld [vmem:[%s4036_s0 + $0x2f0] sm:$0xff]  ;;  %v2157_v3 = vpack.c.bf16 %v395_v56, %v393_v50  ;;  %v442_v4 = vld [vmem:[%s4036_s0 + $0x308] sm:$0xff]  ;;  %v444_v5 = vld [vmem:[%s4036_s0 + $0x318] sm:$0xff] }
  0x2a   : > { %2136 = vmatprep.subr.bf16.mxu0 %v2135_v52  ;;  %v2936_v52 = vpack.c.bf16 %v436_v48, %v434_v46  ;;  %v397_v8 = vld [vmem:[%s4036_s0 + $0x1a0] sm:$0xff]  ;;  %v402_v11 = vld [vmem:[%s4036_s0 + $0x1c8] sm:$0xff]  ;;  %v404_v12 = vld [vmem:[%s4036_s0 + $0x1d8] sm:$0xff]  ;;  %v2993_v14 = vpack.c.bf16 %v444_v5, %v442_v4 }
  0x2b   : > { %2326 = vmatpush1.bf16.msra.mxu1 %v2893_v33  ;;  %v441_v15 = vld [vmem:[%s4036_s0 + $0x300] sm:$0xff]  ;;  %v443_v16 = vld [vmem:[%s4036_s0 + $0x310] sm:$0xff]  ;;  %v446_v18 = vld [vmem:[%s4036_s0 + $0x328] sm:$0xff] }
  0x2c   : > { %2314 = vmatprep.subr.bf16.mxu1 %v2912_v41  ;;  %v448_v20 = vld [vmem:[%s4036_s0 + $0x338] sm:$0xff]  ;;  %v401_v23 = vld [vmem:[%s4036_s0 + $0x1c0] sm:$0xff]  ;;  %v403_v24 = vld [vmem:[%s4036_s0 + $0x1d0] sm:$0xff]  ;;  %v3020_v27 = vpack.c.bf16 %v443_v16, %v441_v15 }
  0x2d   : > { %2138 = vmatpush1.bf16.msra.mxu0 %v2137_v61  ;;  %v400_v61 = vld [vmem:[%s4036_s0 + $0x1b8] sm:$0xff]  ;;  %v406_v25 = vld [vmem:[%s4036_s0 + $0x1e8] sm:$0xff]  ;;  %v3023_v28 = vpack.c.bf16 %v448_v20, %v446_v18  ;;  %v445_v29 = vld [vmem:[%s4036_s0 + $0x320] sm:$0xff]  ;;  %v2165_v31 = vpack.c.bf16 %v403_v24, %v401_v23 }
  0x2e   : > { %2140 = vmatprep.subr.bf16.mxu0 %v2139_v1  ;;  %v437_v1 = vld [vmem:[%s4036_s0 + $0x2e0] sm:$0xff]  ;;  %v2159_v7 = vpack.c.bf16 %v400_v61, %v398_v60  ;;  %v447_v30 = vld [vmem:[%s4036_s0 + $0x330] sm:$0xff]  ;;  %v452_v35 = vld [vmem:[%s4036_s0 + $0x358] sm:$0xff] }
  0x2f   : > { %2327 = vmatpush1.bf16.msra.mxu1 %v2923_v45  ;;  %v280_v36 = vld [vmem:[%s2745_s26 + $0x378] sm:$0xff]  ;;  %v407_v39 = vld [vmem:[%s4036_s0 + $0x1f0] sm:$0xff]  ;;  %v3046_v40 = vpack.c.bf16 %v447_v30, %v445_v29  ;;  %v449_v43 = vld [vmem:[%s4036_s0 + $0x340] sm:$0xff] }
  0x30   : > { %2315 = vmatprep.subr.bf16.mxu1 %v2936_v52  ;;  %2057 = vmatprep.mubr.msk.f32.mxu1 %vm459_vm0, %v280_v36  ;;  %v451_v44 = vld [vmem:[%s4036_s0 + $0x350] sm:$0xff]  ;;  %v454_v48 = vld [vmem:[%s4036_s0 + $0x368] sm:$0xff]  ;;  %v453_v54 = vld [vmem:[%s4036_s0 + $0x360] sm:$0xff] }
  0x31   : > { %2142 = vmatpush1.bf16.msra.mxu0 %v2141_v10  ;;  %v399_v10 = vld [vmem:[%s4036_s0 + $0x1b0] sm:$0xff]  ;;  %v3064_v50 = vpack.c.bf16 %v451_v44, %v449_v43  ;;  %v169_v56 = vld [vmem:[%s2745_s26] sm:$0xff]  ;;  %v174_v57 = vld [vmem:[%s2745_s26 + $0x28] sm:$0xff] }
  0x32   : > { %2144 = vmatprep.subr.bf16.mxu0 %v2143_v13  ;;  %v2990_v13 = vpack.c.bf16 %v439_v2, %v437_v1  ;;  %v2161_v17 = vpack.c.bf16 %v399_v10, %v397_v8  ;;  %v173_v60 = vld [vmem:[%s2745_s26 + $0x20] sm:$0xff]  ;;  %v178_v61 = vld [vmem:[%s2745_s26 + $0x48] sm:$0xff]  ;;  %v279_v2 = vld [vmem:[%s2745_s26 + $0x370] sm:$0xff] }
  0x33   : > { %2328 = vmatpush1.bf16.msra.mxu1 %v2960_v62  ;;  %v177_v1 = vld [vmem:[%s2745_s26 + $0x40] sm:$0xff]  ;;  %v283_v5 = vld [vmem:[%s2745_s26 + $0x390] sm:$0xff]  ;;  %v190_v10 = vld [vmem:[%s2745_s26 + $0xa8] sm:$0xff] }
  0x34   : > { %2316 = vmatprep.subr.bf16.mxu1 %v2963_v63  ;;  %v181_v4 = vld [vmem:[%s2745_s26 + $0x60] sm:$0xff]  ;;  %v287_v8 = vld [vmem:[%s2745_s26 + $0x3b0] sm:$0xff]  ;;  %v198_v16 = vld [vmem:[%s2745_s26 + $0xe8] sm:$0xff] }
  0x35   : > { %2146 = vmatpush1.bf16.msra.mxu0 %v2145_v22  ;;  %v2163_v22 = vpack.c.bf16 %v404_v12, %v402_v11  ;;  %v291_v11 = vld [vmem:[%s2745_s26 + $0x3d0] sm:$0xff]  ;;  %v194_v12 = vld [vmem:[%s2745_s26 + $0xc8] sm:$0xff]  ;;  %v225_v43 = vld [vmem:[%s2745_s26 + $0x1c0] sm:$0xff] }
  0x36   : > { %2148 = vmatprep.subr.bf16.mxu0 %v2147_v26  ;;  %v408_v26 = vld [vmem:[%s4036_s0 + $0x1f8] sm:$0xff]  ;;  %v295_v15 = vld [vmem:[%s2745_s26 + $0x3f0] sm:$0xff]  ;;  %v202_v18 = vld [vmem:[%s2745_s26 + $0x108] sm:$0xff] }
  0x37   : > { %2329 = vmatpush1.bf16.msra.mxu1 %v2990_v13  ;;  %v2167_v37 = vpack.c.bf16 %v408_v26, %v406_v25  ;;  %v303_v20 = vld [vmem:[%s2745_s26 + $0x430] sm:$0xff]  ;;  %v210_v24 = vld [vmem:[%s2745_s26 + $0x148] sm:$0xff]  ;;  %vm2304_vm3 = vmpackc.low %vm1419_vm1, %vm2589_vm2 }
  0x38   : > { %2317 = vmatprep.subr.bf16.mxu1 %v2993_v14  ;;  %v307_v23 = vld [vmem:[%s2745_s26 + $0x450] sm:$0xff]  ;;  %v214_v26 = vld [vmem:[%s2745_s26 + $0x168] sm:$0xff] }
  0x39   : > { %2150 = vmatpush1.bf16.msra.mxu0 %v2149_v34  ;;  %v450_v34 = vld [vmem:[%s4036_s0 + $0x348] sm:$0xff]  ;;  %v311_v25 = vld [vmem:[%s2745_s26 + $0x470] sm:$0xff] }
  0x3a   : > { %2152 = vmatprep.subr.bf16.mxu0 %v2151_v38  ;;  %v405_v38 = vld [vmem:[%s4036_s0 + $0x1e0] sm:$0xff]  ;;  %v3049_v42 = vpack.c.bf16 %v452_v35, %v450_v34  ;;  %v315_v29 = vld [vmem:[%s2745_s26 + $0x490] sm:$0xff]  ;;  %v218_v30 = vld [vmem:[%s2745_s26 + $0x188] sm:$0xff] }
  0x3b   : > { %2330 = vmatpush1.bf16.msra.mxu1 %v3020_v27  ;;  %v2169_v46 = vpack.c.bf16 %v407_v39, %v405_v38  ;;  %v217_v34 = vld [vmem:[%s2745_s26 + $0x180] sm:$0xff]  ;;  %v319_v35 = vld [vmem:[%s2745_s26 + $0x4b0] sm:$0xff]  ;;  %v222_v36 = vld [vmem:[%s2745_s26 + $0x1a8] sm:$0xff] }
  0x3c   : > { %2318 = vmatprep.subr.bf16.mxu1 %v3023_v28  ;;  %v221_v38 = vld [vmem:[%s2745_s26 + $0x1a0] sm:$0xff]  ;;  %v323_v39 = vld [vmem:[%s2745_s26 + $0x4d0] sm:$0xff] }
  0x3d   : > { %2154 = vmatpush1.bf16.msra.mxu0 %v2153_v49  ;;  %v456_v49 = vld [vmem:[%s4036_s0 + $0x378] sm:$0xff]  ;;  %v327_v44 = vld [vmem:[%s2745_s26 + $0x4f0] sm:$0xff] }
  0x3e   : > { %2156 = vmatprep.subr.bf16.mxu0 %v2155_v55  ;;  %v3067_v53 = vpack.c.bf16 %v456_v49, %v454_v48  ;;  %v455_v55 = vld [vmem:[%s4036_s0 + $0x370] sm:$0xff]  ;;  %v332_v48 = vld [vmem:[%s2745_s26 + $0x518] sm:$0xff]  ;;  %v229_v49 = vld [vmem:[%s2745_s26 + $0x1e0] sm:$0xff] }
  0x3f   : > { %2331 = vmatpush1.bf16.msra.mxu1 %v3046_v40  ;;  %v3079_v58 = vpack.c.bf16 %v455_v55, %v453_v54  ;;  %v336_v54 = vld [vmem:[%s2745_s26 + $0x538] sm:$0xff]  ;;  %v233_v55 = vld [vmem:[%s2745_s26 + $0x200] sm:$0xff] }
  0x40   : > { %2319 = vmatprep.subr.bf16.mxu1 %v3049_v42 }
  0x41   : > { %2158 = vmatpush1.bf16.msra.mxu0 %v2157_v3  ;;  %v284_v3 = vld [vmem:[%s2745_s26 + $0x398] sm:$0xff] }
  0x42   : > { %2160 = vmatprep.subr.bf16.mxu0 %v2159_v7  ;;  %v186_v7 = vld [vmem:[%s2745_s26 + $0x88] sm:$0xff] }
  0x43   : > { %2332 = vmatpush1.bf16.msra.mxu1 %v3064_v50 }
  0x44   : > { %2320 = vmatprep.subr.bf16.mxu1 %v3067_v53 }
  0x45   : > { %2162 = vmatpush1.bf16.msra.mxu0 %v2161_v17  ;;  %v299_v17 = vld [vmem:[%s2745_s26 + $0x410] sm:$0xff] }
  0x46   : > { %2164 = vmatprep.subr.bf16.mxu0 %v2163_v22  ;;  %v206_v22 = vld [vmem:[%s2745_s26 + $0x128] sm:$0xff] }
  0x47   : > { %2333 = vmatpush1.bf16.msra.mxu1 %v3079_v58 }
  0x49   : > { %2166 = vmatpush1.bf16.msra.mxu0 %v2165_v31  ;;  %v320_v31 = vld [vmem:[%s2745_s26 + $0x4b8] sm:$0xff] }
  0x4a   : > { %2168 = vmatprep.subr.bf16.mxu0 %v2167_v37  ;;  %v324_v37 = vld [vmem:[%s2745_s26 + $0x4d8] sm:$0xff] }
  0x4d   : > { %2170 = vmatpush1.bf16.msra.mxu0 %v2169_v46  ;;  %v230_v46 = vld [vmem:[%s2745_s26 + $0x1e8] sm:$0xff] }
  0x4e   : > { %2172 = vmatprep.subr.bf16.mxu0 %v2769_v47  ;;  %v3087_v47 = vld [vmem:[%s4036_s0 + $0x388] sm:$0xff] }
  0x4f   : > { %2321 = vmatprep.subr.mxu1 %v3087_v47 }
  0x50   : > { %657 = vmatmul.mubr.f32.vlgmr.msra.gmra.mrb[0].mxu0 %v169_v56  ;;  %v335_v56 = vld [vmem:[%s2745_s26 + $0x530] sm:$0xff] }
  0x51   : > { %2174 = vmatpush1.bf16.msra.mxu0 %v2777_v51  ;;  %662 = vmatprep.mubr.f32.mxu0 %v174_v57  ;;  %v3096_v51 = vld [vmem:[%s4036_s0 + $0x380] sm:$0xff]  ;;  %v238_v57 = vld [vmem:[%s2745_s26 + $0x228] sm:$0xff] }
  0x52   : > { %2176 = vmatprep.subr.bf16.mxu0 %v2799_v59  ;;  %v182_v59 = vld [vmem:[%s2745_s26 + $0x68] sm:$0xff]  ;;  %2334 = vmatpush1.msra.mxu1 %v3096_v51 }
  0x53   : > { %1148 = vmatmul.mubr.f32.vlgmr.msra.gmra.mrb[0].mxu1 %v279_v2  ;;  %v343_v2 = vld [vmem:[%s2745_s26 + $0x570] sm:$0x1] }
  0x54   : > { %663 = vmatmul.mubr.f32.gmra.mrb[2].mxu0 %v173_v60  ;;  %2058 = vmatprep.mubr.msk.f32.mxu1 %vm459_vm0, %v284_v3  ;;  %v237_v60 = vld [vmem:[%s2745_s26 + $0x220] sm:$0xff] }
  0x55   : > { %668 = vmatprep.mubr.f32.mxu0 %v178_v61  ;;  %2178 = vmatpush1.bf16.msra.mxu0 %v2810_v0  ;;  %v288_v0 = vld [vmem:[%s2745_s26 + $0x3b8] sm:$0xff]  ;;  %v242_v61 = vld [vmem:[%s2745_s26 + $0x248] sm:$0xff]  ;;  %v245_v3 = vld [vmem:[%s2745_s26 + $0x260] sm:$0xff] }
  0x56   : > { %2180 = vmatprep.subr.bf16.mxu0 %v2825_v6  ;;  %v185_v6 = vld [vmem:[%s2745_s26 + $0x80] sm:$0xff] }
  0x57   : > { %1154 = vmatmul.mubr.f32.gmra.mrb[2].mxu1 %v283_v5  ;;  %v249_v5 = vld [vmem:[%s2745_s26 + $0x280] sm:$0xff] }
  0x58   : > { %669 = vmatmul.mubr.f32.gmra.mrb[4].mxu0 %v177_v1  ;;  %2059 = vmatprep.mubr.msk.f32.mxu1 %vm459_vm0, %v288_v0  ;;  %v241_v1 = vld [vmem:[%s2745_s26 + $0x240] sm:$0xff] }
  0x59   : > { %674 = vmatprep.mubr.f32.mxu0 %v182_v59  ;;  %2182 = vmatpush1.bf16.msra.mxu0 %v2834_v9  ;;  %v292_v9 = vld [vmem:[%s2745_s26 + $0x3d8] sm:$0xff]  ;;  %v246_v59 = vld [vmem:[%s2745_s26 + $0x268] sm:$0xff]  ;;  %v253_v0 = vld [vmem:[%s2745_s26 + $0x2a0] sm:$0xff] }
  0x5a   : > { %2184 = vmatprep.subr.bf16.mxu0 %v2858_v19  ;;  %v189_v19 = vld [vmem:[%s2745_s26 + $0xa0] sm:$0xff] }
  0x5b   : > { %1160 = vmatmul.mubr.f32.gmra.mrb[4].mxu1 %v287_v8  ;;  %v257_v8 = vld [vmem:[%s2745_s26 + $0x2c0] sm:$0xff] }
  0x5c   : > { %675 = vmatmul.mubr.f32.gmra.mrb[6].mxu0 %v181_v4  ;;  %2060 = vmatprep.mubr.msk.f32.mxu1 %vm459_vm0, %v292_v9  ;;  %v250_v4 = vld [vmem:[%s2745_s26 + $0x288] sm:$0xff]  ;;  %v261_v9 = vld [vmem:[%s2745_s26 + $0x2e0] sm:$0xff] }
  0x5d   : > { %680 = vmatprep.mubr.f32.mxu0 %v186_v7  ;;  %2186 = vmatpush1.bf16.msra.mxu0 %v2864_v21  ;;  %v296_v21 = vld [vmem:[%s2745_s26 + $0x3f8] sm:$0xff]  ;;  %v254_v7 = vld [vmem:[%s2745_s26 + $0x2a8] sm:$0xff] }
  0x5e   : > { %2188 = vmatprep.subr.bf16.mxu0 %v2891_v32  ;;  %v193_v32 = vld [vmem:[%s2745_s26 + $0xc0] sm:$0xff] }
  0x5f   : > { %1166 = vmatmul.mubr.f32.gmra.mrb[6].mxu1 %v291_v11  ;;  %v265_v11 = vld [vmem:[%s2745_s26 + $0x300] sm:$0xff] }
  0x60   : > { %681 = vmatmul.mubr.f32.gmra.mrb[8].mxu0 %v185_v6  ;;  %2061 = vmatprep.mubr.msk.f32.mxu1 %vm459_vm0, %v296_v21  ;;  %v258_v6 = vld [vmem:[%s2745_s26 + $0x2c8] sm:$0xff]  ;;  %v269_v21 = vld [vmem:[%s2745_s26 + $0x320] sm:$0xff] }
  0x61   : > { %686 = vmatprep.mubr.f32.mxu0 %v190_v10  ;;  %2190 = vmatpush1.bf16.msra.mxu0 %v2893_v33  ;;  %v300_v33 = vld [vmem:[%s2745_s26 + $0x418] sm:$0xff]  ;;  %v262_v10 = vld [vmem:[%s2745_s26 + $0x2e8] sm:$0xff] }
  0x62   : > { %2192 = vmatprep.subr.bf16.mxu0 %v2912_v41  ;;  %v197_v41 = vld [vmem:[%s2745_s26 + $0xe0] sm:$0xff] }
  0x63   : > { %1172 = vmatmul.mubr.f32.gmra.mrb[8].mxu1 %v295_v15  ;;  %v273_v15 = vld [vmem:[%s2745_s26 + $0x340] sm:$0xff] }
  0x64   : > { %687 = vmatmul.mubr.f32.gmra.mrb[10].mxu0 %v189_v19  ;;  %2062 = vmatprep.mubr.msk.f32.mxu1 %vm459_vm0, %v300_v33  ;;  %v266_v19 = vld [vmem:[%s2745_s26 + $0x308] sm:$0xff]  ;;  %v277_v33 = vld [vmem:[%s2745_s26 + $0x360] sm:$0xff] }
  0x65   : > { %692 = vmatprep.mubr.f32.mxu0 %v194_v12  ;;  %2194 = vmatpush1.bf16.msra.mxu0 %v2923_v45  ;;  %v304_v45 = vld [vmem:[%s2745_s26 + $0x438] sm:$0xff]  ;;  %v270_v12 = vld [vmem:[%s2745_s26 + $0x328] sm:$0xff] }
  0x66   : > { %2196 = vmatprep.subr.bf16.mxu0 %v2936_v52  ;;  %v201_v52 = vld [vmem:[%s2745_s26 + $0x100] sm:$0xff] }
  0x67   : > { %1178 = vmatmul.mubr.f32.gmra.mrb[10].mxu1 %v299_v17  ;;  %v281_v17 = vld [vmem:[%s2745_s26 + $0x380] sm:$0xff] }
  0x68   : > { %693 = vmatmul.mubr.f32.gmra.mrb[12].mxu0 %v193_v32  ;;  %2063 = vmatprep.mubr.msk.f32.mxu1 %vm459_vm0, %v304_v45  ;;  %v274_v32 = vld [vmem:[%s2745_s26 + $0x348] sm:$0xff]  ;;  %v285_v45 = vld [vmem:[%s2745_s26 + $0x3a0] sm:$0xff] }
  0x69   : > { %698 = vmatprep.mubr.f32.mxu0 %v198_v16  ;;  %2198 = vmatpush1.bf16.msra.mxu0 %v2960_v62  ;;  %v308_v62 = vld [vmem:[%s2745_s26 + $0x458] sm:$0xff]  ;;  %v278_v16 = vld [vmem:[%s2745_s26 + $0x368] sm:$0xff] }
  0x6a   : > { %2200 = vmatprep.subr.bf16.mxu0 %v2963_v63  ;;  %v205_v63 = vld [vmem:[%s2745_s26 + $0x120] sm:$0xff] }
  0x6b   : > { %1184 = vmatmul.mubr.f32.gmra.mrb[12].mxu1 %v303_v20  ;;  %v289_v20 = vld [vmem:[%s2745_s26 + $0x3c0] sm:$0xff] }
  0x6c   : > { %699 = vmatmul.mubr.f32.gmra.mrb[14].mxu0 %v197_v41  ;;  %2064 = vmatprep.mubr.msk.f32.mxu1 %vm459_vm0, %v308_v62  ;;  %v282_v41 = vld [vmem:[%s2745_s26 + $0x388] sm:$0xff]  ;;  %v293_v62 = vld [vmem:[%s2745_s26 + $0x3e0] sm:$0xff] }
  0x6d   : > { %704 = vmatprep.mubr.f32.mxu0 %v202_v18  ;;  %2202 = vmatpush1.bf16.msra.mxu0 %v2990_v13  ;;  %v312_v13 = vld [vmem:[%s2745_s26 + $0x478] sm:$0xff]  ;;  %v286_v18 = vld [vmem:[%s2745_s26 + $0x3a8] sm:$0xff] }
  0x6e   : > { %2204 = vmatprep.subr.bf16.mxu0 %v2993_v14  ;;  %v209_v14 = vld [vmem:[%s2745_s26 + $0x140] sm:$0xff] }
  0x6f   : > { %1190 = vmatmul.mubr.f32.gmra.mrb[14].mxu1 %v307_v23  ;;  %v297_v23 = vld [vmem:[%s2745_s26 + $0x400] sm:$0xff] }
  0x70   : > { %705 = vmatmul.mubr.f32.gmra.mrb[16].mxu0 %v201_v52  ;;  %2065 = vmatprep.mubr.msk.f32.mxu1 %vm459_vm0, %v312_v13  ;;  %v290_v52 = vld [vmem:[%s2745_s26 + $0x3c8] sm:$0xff]  ;;  %v301_v13 = vld [vmem:[%s2745_s26 + $0x420] sm:$0xff] }
  0x71   : > { %710 = vmatprep.mubr.f32.mxu0 %v206_v22  ;;  %2206 = vmatpush1.bf16.msra.mxu0 %v3020_v27  ;;  %v316_v27 = vld [vmem:[%s2745_s26 + $0x498] sm:$0xff]  ;;  %v294_v22 = vld [vmem:[%s2745_s26 + $0x3e8] sm:$0xff] }
  0x72   : > { %2208 = vmatprep.subr.bf16.mxu0 %v3023_v28  ;;  %v213_v28 = vld [vmem:[%s2745_s26 + $0x160] sm:$0xff] }
  0x73   : > { %1196 = vmatmul.mubr.f32.gmra.mrb[16].mxu1 %v311_v25  ;;  %v305_v25 = vld [vmem:[%s2745_s26 + $0x440] sm:$0xff] }
  0x74   : > { %711 = vmatmul.mubr.f32.gmra.mrb[18].mxu0 %v205_v63  ;;  %2066 = vmatprep.mubr.msk.f32.mxu1 %vm459_vm0, %v316_v27  ;;  %v298_v63 = vld [vmem:[%s2745_s26 + $0x408] sm:$0xff]  ;;  %v309_v27 = vld [vmem:[%s2745_s26 + $0x460] sm:$0xff] }
  0x75   : > { %716 = vmatprep.mubr.f32.mxu0 %v210_v24  ;;  %2210 = vmatpush1.bf16.msra.mxu0 %v3046_v40  ;;  %v226_v40 = vld [vmem:[%s2745_s26 + $0x1c8] sm:$0xff] }
  0x76   : > { %2212 = vmatprep.subr.bf16.mxu0 %v3049_v42  ;;  %v328_v42 = vld [vmem:[%s2745_s26 + $0x4f8] sm:$0xff]  ;;  %v302_v24 = vld [vmem:[%s2745_s26 + $0x428] sm:$0xff] }
  0x77   : > { %1202 = vmatmul.mubr.f32.gmra.mrb[18].mxu1 %v315_v29  ;;  %v313_v29 = vld [vmem:[%s2745_s26 + $0x480] sm:$0xff] }
  0x78   : > { %717 = vmatmul.mubr.f32.gmra.mrb[20].mxu0 %v209_v14  ;;  %2067 = vmatprep.mubr.msk.f32.mxu1 %vm459_vm0, %v320_v31  ;;  %v306_v14 = vld [vmem:[%s2745_s26 + $0x448] sm:$0xff]  ;;  %v317_v31 = vld [vmem:[%s2745_s26 + $0x4a0] sm:$0xff] }
  0x79   : > { %722 = vmatprep.mubr.f32.mxu0 %v214_v26  ;;  %2214 = vmatpush1.bf16.msra.mxu0 %v3064_v50  ;;  %v331_v50 = vld [vmem:[%s2745_s26 + $0x510] sm:$0xff]  ;;  %v310_v26 = vld [vmem:[%s2745_s26 + $0x468] sm:$0xff] }
  0x7a   : > { %2216 = vmatprep.subr.bf16.mxu0 %v3067_v53  ;;  %v234_v53 = vld [vmem:[%s2745_s26 + $0x208] sm:$0xff] }
  0x7b   : > { %1208 = vmatmul.mubr.f32.gmra.mrb[20].mxu1 %v319_v35  ;;  %v321_v35 = vld [vmem:[%s2745_s26 + $0x4c0] sm:$0xff] }
  0x7c   : > { %723 = vmatmul.mubr.f32.gmra.mrb[22].mxu0 %v213_v28  ;;  %2068 = vmatprep.mubr.msk.f32.mxu1 %vm459_vm0, %v324_v37  ;;  %v314_v28 = vld [vmem:[%s2745_s26 + $0x488] sm:$0xff]  ;;  %v325_v37 = vld [vmem:[%s2745_s26 + $0x4e0] sm:$0xff] }
  0x7d   : > { %728 = vmatprep.mubr.f32.mxu0 %v218_v30  ;;  %2218 = vmatpush1.bf16.msra.mxu0 %v3079_v58  ;;  %v340_v58 = vld [vmem:[%s2745_s26 + $0x558] sm:$0xff]  ;;  %v318_v30 = vld [vmem:[%s2745_s26 + $0x4a8] sm:$0xff] }
  0x7e   : > { %969 = vmatprep.subr.mxu0 %v3087_v47  ;;  %v339_v47 = vld [vmem:[%s2745_s26 + $0x550] sm:$0xff] }
  0x7f   : > { %1214 = vmatmul.mubr.f32.gmra.mrb[22].mxu1 %v323_v39  ;;  %v329_v39 = vld [vmem:[%s2745_s26 + $0x500] sm:$0xff] }
  0x80   : > { %729 = vmatmul.mubr.f32.gmra.mrb[24].mxu0 %v217_v34  ;;  %2069 = vmatprep.mubr.msk.f32.mxu1 %vm459_vm0, %v328_v42  ;;  %v322_v34 = vld [vmem:[%s2745_s26 + $0x4c8] sm:$0xff]  ;;  %v333_v42 = vld [vmem:[%s2745_s26 + $0x520] sm:$0xff] }
  0x81   : > { %734 = vmatprep.mubr.f32.mxu0 %v222_v36  ;;  %970 = vmatpush1.msra.mxu0 %v3096_v51  ;;  %v344_v51 = vld [vmem:[%s2745_s26 + $0x578] sm:$0x1]  ;;  %v326_v36 = vld [vmem:[%s2745_s26 + $0x4e8] sm:$0xff] }
  0x83   : > { %1220 = vmatmul.mubr.f32.gmra.mrb[24].mxu1 %v327_v44  ;;  %v337_v44 = vld [vmem:[%s2745_s26 + $0x540] sm:$0xff] }
  0x84   : > { %735 = vmatmul.mubr.f32.gmra.mrb[26].mxu0 %v221_v38  ;;  %2070 = vmatprep.mubr.msk.f32.mxu1 %vm459_vm0, %v332_v48  ;;  %v330_v38 = vld [vmem:[%s2745_s26 + $0x508] sm:$0xff]  ;;  %v341_v48 = vld [vmem:[%s2745_s26 + $0x560] sm:$0x1] }
  0x85   : > { %740 = vmatprep.mubr.f32.mxu0 %v226_v40  ;;  %v334_v40 = vld [vmem:[%s2745_s26 + $0x528] sm:$0xff] }
  0x87   : > { %1226 = vmatmul.mubr.f32.gmra.mrb[26].mxu1 %v331_v50  ;;  %v171_v50 = vld [vmem:[%s2745_s26 + $0x10] sm:$0xff] }
  0x88   : > { %741 = vmatmul.mubr.f32.gmra.mrb[28].mxu0 %v225_v43  ;;  %2071 = vmatprep.mubr.msk.f32.mxu1 %vm459_vm0, %v336_v54  ;;  %v338_v43 = vld [vmem:[%s2745_s26 + $0x548] sm:$0xff]  ;;  %v175_v54 = vld [vmem:[%s2745_s26 + $0x30] sm:$0xff] }
  0x89   : > { %746 = vmatprep.mubr.f32.mxu0 %v230_v46  ;;  %v342_v46 = vld [vmem:[%s2745_s26 + $0x568] sm:$0x1] }
  0x8b   : > { %1232 = vmatmul.mubr.f32.gmra.mrb[28].mxu1 %v335_v56  ;;  %v179_v56 = vld [vmem:[%s2745_s26 + $0x50] sm:$0xff] }
  0x8c   : > { %747 = vmatmul.mubr.f32.gmra.mrb[30].mxu0 %v229_v49  ;;  %2072 = vmatprep.mubr.msk.f32.mxu1 %vm459_vm0, %v340_v58  ;;  %v172_v49 = vld [vmem:[%s2745_s26 + $0x18] sm:$0xff]  ;;  %v183_v58 = vld [vmem:[%s2745_s26 + $0x70] sm:$0xff] }
  0x8d   : > { %752 = vmatprep.mubr.f32.mxu0 %v234_v53  ;;  %v176_v53 = vld [vmem:[%s2745_s26 + $0x38] sm:$0xff] }
  0x8f   : > { %1238 = vmatmul.mubr.f32.gmra.mrb[30].mxu1 %v339_v47  ;;  %v187_v47 = vld [vmem:[%s2745_s26 + $0x90] sm:$0xff] }
  0x90   : > { %753 = vmatmul.mubr.f32.gmra.mrb[32].mxu0 %v233_v55  ;;  %2073 = vmatprep.mubr.msk.f32.mxu1 %vm459_vm0, %v344_v51  ;;  %v180_v55 = vld [vmem:[%s2745_s26 + $0x58] sm:$0xff]  ;;  %v191_v51 = vld [vmem:[%s2745_s26 + $0xb0] sm:$0xff] }
  0x91   : > { %758 = vmatprep.mubr.f32.mxu0 %v238_v57  ;;  %v184_v57 = vld [vmem:[%s2745_s26 + $0x78] sm:$0xff] }
  0x93   : > { %1244 = vmatmul.mubr.f32.gmra.mrb[32].mxu1 %v343_v2  ;;  %v195_v2 = vld [vmem:[%s2745_s26 + $0xd0] sm:$0xff] }
  0x94   : > { %759 = vmatmul.mubr.f32.gmra.mrb[34].mxu0 %v237_v60  ;;  %v188_v60 = vld [vmem:[%s2745_s26 + $0x98] sm:$0xff] }
  0x95   : > { %764 = vmatprep.mubr.f32.mxu0 %v242_v61  ;;  %v192_v61 = vld [vmem:[%s2745_s26 + $0xb8] sm:$0xff] }
  0x98   : > { %765 = vmatmul.mubr.f32.gmra.mrb[36].mxu0 %v241_v1  ;;  %v196_v1 = vld [vmem:[%s2745_s26 + $0xd8] sm:$0xff] }
  0x99   : > { %770 = vmatprep.mubr.f32.mxu0 %v246_v59  ;;  %v200_v59 = vld [vmem:[%s2745_s26 + $0xf8] sm:$0xff] }
  0x9c   : > { %771 = vmatmul.mubr.f32.gmra.mrb[38].mxu0 %v245_v3  ;;  %v199_v3 = vld [vmem:[%s2745_s26 + $0xf0] sm:$0xff] }
  0x9d   : > { %776 = vmatprep.mubr.f32.mxu0 %v250_v4  ;;  %v204_v4 = vld [vmem:[%s2745_s26 + $0x118] sm:$0xff] }
  0xa0   : > { %777 = vmatmul.mubr.f32.gmra.mrb[40].mxu0 %v249_v5  ;;  %v203_v5 = vld [vmem:[%s2745_s26 + $0x110] sm:$0xff] }
  0xa1   : > { %782 = vmatprep.mubr.f32.mxu0 %v254_v7  ;;  %v208_v7 = vld [vmem:[%s2745_s26 + $0x138] sm:$0xff] }
  0xa4   : > { %783 = vmatmul.mubr.f32.gmra.mrb[42].mxu0 %v253_v0  ;;  %v207_v0 = vld [vmem:[%s2745_s26 + $0x130] sm:$0xff] }
  0xa5   : > { %788 = vmatprep.mubr.f32.mxu0 %v258_v6  ;;  %v212_v6 = vld [vmem:[%s2745_s26 + $0x158] sm:$0xff] }
  0xa8   : > { %789 = vmatmul.mubr.f32.gmra.mrb[44].mxu0 %v257_v8  ;;  %v211_v8 = vld [vmem:[%s2745_s26 + $0x150] sm:$0xff] }
  0xa9   : > { %794 = vmatprep.mubr.f32.mxu0 %v262_v10  ;;  %v216_v10 = vld [vmem:[%s2745_s26 + $0x178] sm:$0xff] }
  0xac   : > { %795 = vmatmul.mubr.f32.gmra.mrb[46].mxu0 %v261_v9  ;;  %v215_v9 = vld [vmem:[%s2745_s26 + $0x170] sm:$0xff] }
  0xad   : > { %800 = vmatprep.mubr.f32.mxu0 %v266_v19  ;;  %v220_v19 = vld [vmem:[%s2745_s26 + $0x198] sm:$0xff] }
  0xb0   : > { %801 = vmatmul.mubr.f32.gmra.mrb[48].mxu0 %v265_v11 }
  0xb1   : > { %806 = vmatprep.mubr.f32.mxu0 %v270_v12 }
  0xb4   : > { %807 = vmatmul.mubr.f32.gmra.mrb[50].mxu0 %v269_v21  ;;  %v219_v21 = vld [vmem:[%s2745_s26 + $0x190] sm:$0xff] }
  0xb5   : > { %812 = vmatprep.mubr.f32.mxu0 %v274_v32  ;;  %v224_v32 = vld [vmem:[%s2745_s26 + $0x1b8] sm:$0xff] }
  0xb8   : > { %813 = vmatmul.mubr.f32.gmra.mrb[52].mxu0 %v273_v15 }
  0xb9   : > { %818 = vmatprep.mubr.f32.mxu0 %v278_v16 }
  0xbc   : > { %819 = vmatmul.mubr.f32.gmra.mrb[54].mxu0 %v277_v33  ;;  %v223_v33 = vld [vmem:[%s2745_s26 + $0x1b0] sm:$0xff] }
  0xbd   : > { %824 = vmatprep.mubr.f32.mxu0 %v282_v41  ;;  %v228_v41 = vld [vmem:[%s2745_s26 + $0x1d8] sm:$0xff] }
  0xc0   : > { %825 = vmatmul.mubr.f32.gmra.mrb[56].mxu0 %v281_v17 }
  0xc1   : > { %830 = vmatprep.mubr.f32.mxu0 %v286_v18 }
  0xc4   : > { %831 = vmatmul.mubr.f32.gmra.mrb[58].mxu0 %v285_v45  ;;  %v227_v45 = vld [vmem:[%s2745_s26 + $0x1d0] sm:$0xff] }
  0xc5   : > { %836 = vmatprep.mubr.f32.mxu0 %v290_v52  ;;  %v232_v52 = vld [vmem:[%s2745_s26 + $0x1f8] sm:$0xff] }
  0xc8   : > { %837 = vmatmul.mubr.f32.gmra.mrb[60].mxu0 %v289_v20 }
  0xc9   : > { %842 = vmatprep.mubr.f32.mxu0 %v294_v22 }
  0xcc   : > { %843 = vmatmul.mubr.f32.gmra.mrb[62].mxu0 %v293_v62  ;;  %v231_v62 = vld [vmem:[%s2745_s26 + $0x1f0] sm:$0xff] }
  0xcd   : > { %848 = vmatprep.mubr.f32.mxu0 %v298_v63  ;;  %v236_v63 = vld [vmem:[%s2745_s26 + $0x218] sm:$0xff] }
  0xd0   : > { %849 = vmatmul.mubr.f32.gmra.mrb[64].mxu0 %v297_v23 }
  0xd1   : > { %854 = vmatprep.mubr.f32.mxu0 %v302_v24 }
  0xd4   : > { %855 = vmatmul.mubr.f32.gmra.mrb[66].mxu0 %v301_v13  ;;  %v235_v13 = vld [vmem:[%s2745_s26 + $0x210] sm:$0xff] }
  0xd5   : > { %860 = vmatprep.mubr.f32.mxu0 %v306_v14  ;;  %v240_v14 = vld [vmem:[%s2745_s26 + $0x238] sm:$0xff] }
  0xd8   : > { %861 = vmatmul.mubr.f32.gmra.mrb[68].mxu0 %v305_v25 }
  0xd9   : > { %866 = vmatprep.mubr.f32.mxu0 %v310_v26 }
  0xdc   : > { %867 = vmatmul.mubr.f32.gmra.mrb[70].mxu0 %v309_v27  ;;  %v239_v27 = vld [vmem:[%s2745_s26 + $0x230] sm:$0xff] }
  0xdd   : > { %872 = vmatprep.mubr.f32.mxu0 %v314_v28  ;;  %v244_v28 = vld [vmem:[%s2745_s26 + $0x258] sm:$0xff] }
  0xe0   : > { %873 = vmatmul.mubr.f32.gmra.mrb[72].mxu0 %v313_v29 }
  0xe1   : > { %878 = vmatprep.mubr.f32.mxu0 %v318_v30 }
  0xe4   : > { %879 = vmatmul.mubr.f32.gmra.mrb[74].mxu0 %v317_v31  ;;  %v243_v31 = vld [vmem:[%s2745_s26 + $0x250] sm:$0xff] }
  0xe5   : > { %884 = vmatprep.mubr.f32.mxu0 %v322_v34  ;;  %v248_v34 = vld [vmem:[%s2745_s26 + $0x278] sm:$0xff] }
  0xe8   : > { %885 = vmatmul.mubr.f32.gmra.mrb[76].mxu0 %v321_v35 }
  0xe9   : > { %890 = vmatprep.mubr.f32.mxu0 %v326_v36 }
  0xec   : > { %891 = vmatmul.mubr.f32.gmra.mrb[78].mxu0 %v325_v37  ;;  %v247_v37 = vld [vmem:[%s2745_s26 + $0x270] sm:$0xff] }
  0xed   : > { %896 = vmatprep.mubr.f32.mxu0 %v330_v38  ;;  %v252_v38 = vld [vmem:[%s2745_s26 + $0x298] sm:$0xff] }
  0xf0   : > { %897 = vmatmul.mubr.f32.gmra.mrb[80].mxu0 %v329_v39 }
  0xf1   : > { %902 = vmatprep.mubr.f32.mxu0 %v334_v40 }
  0xf4   : > { %903 = vmatmul.mubr.f32.gmra.mrb[82].mxu0 %v333_v42  ;;  %v251_v42 = vld [vmem:[%s2745_s26 + $0x290] sm:$0xff] }
  0xf5   : > { %908 = vmatprep.mubr.f32.mxu0 %v338_v43  ;;  %v256_v43 = vld [vmem:[%s2745_s26 + $0x2b8] sm:$0xff] }
  0xf8   : > { %909 = vmatmul.mubr.f32.gmra.mrb[84].mxu0 %v337_v44 }
  0xf9   : > { %914 = vmatprep.mubr.f32.mxu0 %v342_v46 }
  0xfc   : > { %915 = vmatmul.mubr.f32.gmra.mrb[86].mxu0 %v341_v48  ;;  %v255_v48 = vld [vmem:[%s2745_s26 + $0x2b0] sm:$0xff] }
  0xfd   : > { %2030 = vmatprep.mubr.msk.f32.mxu0 %vm459_vm0, %v172_v49  ;;  %v260_v49 = vld [vmem:[%s2745_s26 + $0x2d8] sm:$0xff] }
 0x100   : > { %986 = vmatmul.mubr.f32.vlgmr.msra.gmra.mrb[0].mxu0 %v171_v50 }
 0x101   : > { %2031 = vmatprep.mubr.msk.f32.mxu0 %vm459_vm0, %v176_v53 }
 0x104   : > { %992 = vmatmul.mubr.f32.gmra.mrb[2].mxu0 %v175_v54  ;;  %v259_v54 = vld [vmem:[%s2745_s26 + $0x2d0] sm:$0xff] }
 0x105   : > { %2032 = vmatprep.mubr.msk.f32.mxu0 %vm459_vm0, %v180_v55  ;;  %v264_v55 = vld [vmem:[%s2745_s26 + $0x2f8] sm:$0xff] }
 0x108   : > { %998 = vmatmul.mubr.f32.gmra.mrb[4].mxu0 %v179_v56 }
 0x109   : > { %2033 = vmatprep.mubr.msk.f32.mxu0 %vm459_vm0, %v184_v57 }
 0x10c   : > { %1004 = vmatmul.mubr.f32.gmra.mrb[6].mxu0 %v183_v58  ;;  %v263_v58 = vld [vmem:[%s2745_s26 + $0x2f0] sm:$0xff] }
 0x10d   : > { %2034 = vmatprep.mubr.msk.f32.mxu0 %vm459_vm0, %v188_v60  ;;  %v268_v60 = vld [vmem:[%s2745_s26 + $0x318] sm:$0xff] }
 0x110   : > { %1010 = vmatmul.mubr.f32.gmra.mrb[8].mxu0 %v187_v47 }
 0x111   : > { %2035 = vmatprep.mubr.msk.f32.mxu0 %vm459_vm0, %v192_v61 }
 0x114   : > { %1016 = vmatmul.mubr.f32.gmra.mrb[10].mxu0 %v191_v51  ;;  %v267_v51 = vld [vmem:[%s2745_s26 + $0x310] sm:$0xff] }
 0x115   : > { %2036 = vmatprep.mubr.msk.f32.mxu0 %vm459_vm0, %v196_v1  ;;  %v272_v1 = vld [vmem:[%s2745_s26 + $0x338] sm:$0xff] }
 0x118   : > { %1022 = vmatmul.mubr.f32.gmra.mrb[12].mxu0 %v195_v2 }
 0x119   : > { %2037 = vmatprep.mubr.msk.f32.mxu0 %vm459_vm0, %v200_v59 }
 0x11c   : > { %1028 = vmatmul.mubr.f32.gmra.mrb[14].mxu0 %v199_v3  ;;  %v271_v3 = vld [vmem:[%s2745_s26 + $0x330] sm:$0xff] }
 0x11d   : > { %2038 = vmatprep.mubr.msk.f32.mxu0 %vm459_vm0, %v204_v4  ;;  %v276_v4 = vld [vmem:[%s2745_s26 + $0x358] sm:$0xff] }
 0x120   : > { %1034 = vmatmul.mubr.f32.gmra.mrb[16].mxu0 %v203_v5 }
 0x121   : > { %2039 = vmatprep.mubr.msk.f32.mxu0 %vm459_vm0, %v208_v7 }
 0x124   : > { %1040 = vmatmul.mubr.f32.gmra.mrb[18].mxu0 %v207_v0  ;;  %v275_v0 = vld [vmem:[%s2745_s26 + $0x350] sm:$0xff] }
 0x125   : > { %2040 = vmatprep.mubr.msk.f32.mxu0 %vm459_vm0, %v212_v6 }
 0x126   : > { %v3291_v11 = vpop.f32.mrb[0].mxu1 }
 0x127   : > { %v3293_v12 = vpop.f32.mrb[1].mxu1 }
 0x128   : > { %1046 = vmatmul.mubr.f32.gmra.mrb[20].mxu0 %v211_v8 }
 0x129   : > { %2041 = vmatprep.mubr.msk.f32.mxu0 %vm459_vm0, %v216_v10 }
 0x12a   : > { %v3298_v15 = vpop.f32.mrb[2].mxu1 }
 0x12b   : > { %v3300_v16 = vpop.f32.mrb[3].mxu1 }
 0x12c   : > { %1052 = vmatmul.mubr.f32.gmra.mrb[22].mxu0 %v215_v9 }
 0x12d   : > { %2042 = vmatprep.mubr.msk.f32.mxu0 %vm459_vm0, %v220_v19 }
 0x12e   : > { %v3305_v17 = vpop.f32.mrb[4].mxu1 }
 0x12f   : > { %v3307_v18 = vpop.f32.mrb[5].mxu1 }
 0x130   : > { %1058 = vmatmul.mubr.f32.gmra.mrb[24].mxu0 %v219_v21 }
 0x131   : > { %2043 = vmatprep.mubr.msk.f32.mxu0 %vm459_vm0, %v224_v32 }
 0x132   : > { %v3312_v20 = vpop.f32.mrb[6].mxu1 }
 0x133   : > { %v3314_v22 = vpop.f32.mrb[7].mxu1 }
 0x134   : > { %1064 = vmatmul.mubr.f32.gmra.mrb[26].mxu0 %v223_v33 }
 0x135   : > { %2044 = vmatprep.mubr.msk.f32.mxu0 %vm459_vm0, %v228_v41 }
 0x136   : > { %v3319_v23 = vpop.f32.mrb[8].mxu1 }
 0x137   : > { %v3321_v24 = vpop.f32.mrb[9].mxu1 }
 0x138   : > { %1070 = vmatmul.mubr.f32.gmra.mrb[28].mxu0 %v227_v45 }
 0x139   : > { %2045 = vmatprep.mubr.msk.f32.mxu0 %vm459_vm0, %v232_v52 }
 0x13a   : > { %v3326_v25 = vpop.f32.mrb[10].mxu1 }
 0x13b   : > { %v3328_v26 = vpop.f32.mrb[11].mxu1 }
 0x13c   : > { %1076 = vmatmul.mubr.f32.gmra.mrb[30].mxu0 %v231_v62 }
 0x13d   : > { %2046 = vmatprep.mubr.msk.f32.mxu0 %vm459_vm0, %v236_v63 }
 0x13e   : > { %v3333_v29 = vpop.f32.mrb[12].mxu1 }
 0x13f   : > { %v3335_v30 = vpop.f32.mrb[13].mxu1 }
 0x140   : > { %1082 = vmatmul.mubr.f32.gmra.mrb[32].mxu0 %v235_v13 }
 0x141   : > { %2047 = vmatprep.mubr.msk.f32.mxu0 %vm459_vm0, %v240_v14 }
 0x142   : > { %v3340_v35 = vpop.f32.mrb[14].mxu1 }
 0x143   : > { %v3342_v36 = vpop.f32.mrb[15].mxu1 }
 0x144   : > { %1088 = vmatmul.mubr.f32.gmra.mrb[34].mxu0 %v239_v27 }
 0x145   : > { %2048 = vmatprep.mubr.msk.f32.mxu0 %vm459_vm0, %v244_v28 }
 0x146   : > { %v3347_v39 = vpop.f32.mrb[16].mxu1 }
 0x147   : > { %v3349_v40 = vpop.f32.mrb[17].mxu1 }
 0x148   : > { %1094 = vmatmul.mubr.f32.gmra.mrb[36].mxu0 %v243_v31 }
 0x149   : > { %2049 = vmatprep.mubr.msk.f32.mxu0 %vm459_vm0, %v248_v34 }
 0x14a   : > { %v3354_v44 = vpop.f32.mrb[18].mxu1 }
 0x14b   : > { %v3356_v46 = vpop.f32.mrb[19].mxu1 }
 0x14c   : > { %1100 = vmatmul.mubr.f32.gmra.mrb[38].mxu0 %v247_v37 }
 0x14d   : > { %2050 = vmatprep.mubr.msk.f32.mxu0 %vm459_vm0, %v252_v38 }
 0x14e   : > { %v3361_v50 = vpop.f32.mrb[20].mxu1 }
 0x14f   : > { %v3363_v53 = vpop.f32.mrb[21].mxu1 }
 0x150   : > { %1106 = vmatmul.mubr.f32.gmra.mrb[40].mxu0 %v251_v42 }
 0x151   : > { %2051 = vmatprep.mubr.msk.f32.mxu0 %vm459_vm0, %v256_v43 }
 0x152   : > { %v3368_v56 = vpop.f32.mrb[22].mxu1 }
 0x153   : > { %v3370_v57 = vpop.f32.mrb[23].mxu1 }
 0x154   : > { %1112 = vmatmul.mubr.f32.gmra.mrb[42].mxu0 %v255_v48 }
 0x155   : > { %2052 = vmatprep.mubr.msk.f32.mxu0 %vm459_vm0, %v260_v49 }
 0x156   : > { %v3375_v47 = vpop.f32.mrb[24].mxu1 }
 0x157   : > { %v3377_v61 = vpop.f32.mrb[25].mxu1 }
 0x158   : > { %1118 = vmatmul.mubr.f32.gmra.mrb[44].mxu0 %v259_v54 }
 0x159   : > { %2053 = vmatprep.mubr.msk.f32.mxu0 %vm459_vm0, %v264_v55 }
 0x15a   : > { %v3382_v2 = vpop.f32.mrb[26].mxu1 }
 0x15b   : > { %v3384_v59 = vpop.f32.mrb[27].mxu1 }
 0x15c   : > { %1124 = vmatmul.mubr.f32.gmra.mrb[46].mxu0 %v263_v58 }
 0x15d   : > { %2054 = vmatprep.mubr.msk.f32.mxu0 %vm459_vm0, %v268_v60 }
 0x15e   : > { %v3389_v5 = vpop.f32.mrb[28].mxu1 }
 0x15f   : > { %v3391_v7 = vpop.f32.mrb[29].mxu1 }
 0x160   : > { %1130 = vmatmul.mubr.f32.gmra.mrb[48].mxu0 %v267_v51 }
 0x161   : > { %2055 = vmatprep.mubr.msk.f32.mxu0 %vm459_vm0, %v272_v1 }
 0x162   : > { %v3395_v6 = vpop.f32.mrb[30].mxu1 }
 0x163   : > { %v3397_v8 = vpop.f32.mrb[31].mxu1 }
 0x164   : > { %1136 = vmatmul.mubr.f32.gmra.mrb[50].mxu0 %v271_v3 }
 0x165   : > { %2056 = vmatprep.mubr.msk.f32.mxu0 %vm459_vm0, %v276_v4 }
 0x166   : > { %v3399_v10 = vpop.f32.mrb[32].mxu1 }
 0x167   : > { %v3401_v9 = vpop.f32.mrb[33].mxu1 }
 0x168   : > { %1142 = vmatmul.mubr.f32.gmra.mrb[52].mxu0 %v275_v0 }
 0x18f   : > { %v820_v19 = vpop.f32.mrb[54].mxu0 }
 0x190   : > { %v3404_v21 = vadd.f32 %v3291_v11, %v820_v19  ;;  %v822_v32 = vpop.f32.mrb[55].mxu0 }
 0x191   : > { %v3407_v33 = vadd.f32 %v3293_v12, %v822_v32 }
 0x193   : > { %v826_v41 = vpop.f32.mrb[56].mxu0 }
 0x194   : > { %v3410_v45 = vadd.f32 %v3298_v15, %v826_v41  ;;  %v828_v52 = vpop.f32.mrb[57].mxu0 }
 0x195   : > { %v3413_v62 = vadd.f32 %v3300_v16, %v828_v52 }
 0x197   : > { %v832_v63 = vpop.f32.mrb[58].mxu0 }
 0x198   : > { %v3416_v13 = vadd.f32 %v3305_v17, %v832_v63  ;;  %v834_v14 = vpop.f32.mrb[59].mxu0 }
 0x199   : > { %v3419_v11 = vadd.f32 %v3307_v18, %v834_v14 }
 0x19a   : > { %v2277_v12 = vpack.c.bf16 %v3416_v13, %v3410_v45  ;;  %v1253_v45 = vld [vmem:[%s4037_s1 + $0x18] sm:$0xff]  ;;  %v1256_v13 = vld [vmem:[%s4037_s1 + $0x30] sm:$0xff] }
 0x19b   : > { %v2275_v27 = vpack.c.bf16 %v3419_v11, %v3413_v62  ;;  %v838_v15 = vpop.f32.mrb[60].mxu0  ;;  %v1257_v62 = vld [vmem:[%s4037_s1 + $0x38] sm:$0xff]  ;;  %v1260_v11 = vld [vmem:[%s4037_s1 + $0x50] sm:$0xff] }
 0x19c   : > { %v3426_v28 = vadd.f32 %v3312_v20, %v838_v15  ;;  %v840_v16 = vpop.f32.mrb[61].mxu0 }
 0x19d   : > { %v3429_v31 = vadd.f32 %v3314_v22, %v840_v16 }
 0x19f   : > { %v844_v17 = vpop.f32.mrb[62].mxu0 }
 0x1a0   : > { %v3432_v34 = vadd.f32 %v3319_v23, %v844_v17  ;;  %v846_v18 = vpop.f32.mrb[63].mxu0 }
 0x1a1   : > { %v3435_v37 = vadd.f32 %v3321_v24, %v846_v18 }
 0x1a2   : > { %v2281_v38 = vpack.c.bf16 %v3432_v34, %v3426_v28 }
 0x1a3   : > { %v2279_v42 = vpack.c.bf16 %v3435_v37, %v3429_v31  ;;  %v850_v20 = vpop.f32.mrb[64].mxu0  ;;  %v1262_v31 = vld [vmem:[%s4037_s1 + $0x60] sm:$0xff] }
 0x1a4   : > { %v3442_v43 = vadd.f32 %v3326_v25, %v850_v20  ;;  %v852_v22 = vpop.f32.mrb[65].mxu0  ;;  %v1266_v37 = vld [vmem:[%s4037_s1 + $0x80] sm:$0xff] }
 0x1a5   : > { %v3445_v48 = vadd.f32 %v3328_v26, %v852_v22 }
 0x1a7   : > { %v856_v23 = vpop.f32.mrb[66].mxu0 }
 0x1a8   : > { %v3448_v49 = vadd.f32 %v3333_v29, %v856_v23  ;;  %v858_v24 = vpop.f32.mrb[67].mxu0 }
 0x1a9   : > { %v3451_v54 = vadd.f32 %v3335_v30, %v858_v24 }
 0x1aa   : > { %v2285_v55 = vpack.c.bf16 %v3448_v49, %v3442_v43 }
 0x1ab   : > { %v2283_v58 = vpack.c.bf16 %v3451_v54, %v3445_v48  ;;  %v862_v25 = vpop.f32.mrb[68].mxu0  ;;  %v1269_v48 = vld [vmem:[%s4037_s1 + $0x98] sm:$0xff]  ;;  %v1268_v54 = vld [vmem:[%s4037_s1 + $0x90] sm:$0xff] }
 0x1ac   : > { %v3458_v60 = vadd.f32 %v3340_v35, %v862_v25  ;;  %v864_v26 = vpop.f32.mrb[69].mxu0 }
 0x1ad   : > { %v3461_v51 = vadd.f32 %v3342_v36, %v864_v26 }
 0x1af   : > { %v868_v29 = vpop.f32.mrb[70].mxu0 }
 0x1b0   : > { %v3464_v1 = vadd.f32 %v3347_v39, %v868_v29  ;;  %v870_v30 = vpop.f32.mrb[71].mxu0  ;;  %v1251_v29 = vld [vmem:[%s4037_s1 + $0x8] sm:$0xff] }
 0x1b1   : > { %v3467_v3 = vadd.f32 %v3349_v40, %v870_v30  ;;  %1490 = vmatprep.mubr.f32.mxu1 %v1251_v29 }
 0x1b2   : > { %v2289_v4 = vpack.c.bf16 %v3464_v1, %v3458_v60  ;;  %v1275_v60 = vld [vmem:[%s4037_s1 + $0xc8] sm:$0xff]  ;;  %v1278_v1 = vld [vmem:[%s4037_s1 + $0xe0] sm:$0xff] }
 0x1b3   : > { %v2287_v0 = vpack.c.bf16 %v3467_v3, %v3461_v51  ;;  %v874_v35 = vpop.f32.mrb[72].mxu0  ;;  %v1274_v51 = vld [vmem:[%s4037_s1 + $0xc0] sm:$0xff]  ;;  %v1277_v3 = vld [vmem:[%s4037_s1 + $0xd8] sm:$0xff] }
 0x1b4   : > { %v3474_v19 = vadd.f32 %v3354_v44, %v874_v35  ;;  %v876_v36 = vpop.f32.mrb[73].mxu0 }
 0x1b5   : > { %v3477_v32 = vadd.f32 %v3356_v46, %v876_v36 }
 0x1b7   : > { %v880_v39 = vpop.f32.mrb[74].mxu0 }
 0x1b8   : > { %v3480_v41 = vadd.f32 %v3361_v50, %v880_v39  ;;  %v882_v40 = vpop.f32.mrb[75].mxu0 }
 0x1b9   : > { %v3483_v52 = vadd.f32 %v3363_v53, %v882_v40 }
 0x1ba   : > { %v2293_v63 = vpack.c.bf16 %v3480_v41, %v3474_v19  ;;  %v1284_v19 = vld [vmem:[%s4037_s1 + $0x110] sm:$0xff]  ;;  %v1287_v41 = vld [vmem:[%s4037_s1 + $0x128] sm:$0xff] }
 0x1bb   : > { %v2291_v14 = vpack.c.bf16 %v3483_v52, %v3477_v32  ;;  %v886_v44 = vpop.f32.mrb[76].mxu0  ;;  %v1283_v32 = vld [vmem:[%s4037_s1 + $0x108] sm:$0xff]  ;;  %v1286_v52 = vld [vmem:[%s4037_s1 + $0x120] sm:$0xff] }
 0x1bc   : > { %v3490_v15 = vadd.f32 %v3368_v56, %v886_v44  ;;  %v888_v46 = vpop.f32.mrb[77].mxu0 }
 0x1bd   : > { %v3493_v16 = vadd.f32 %v3370_v57, %v888_v46 }
 0x1bf   : > { %v892_v50 = vpop.f32.mrb[78].mxu0 }
 0x1c0   : > { %v3496_v17 = vadd.f32 %v3375_v47, %v892_v50  ;;  %v894_v53 = vpop.f32.mrb[79].mxu0 }
 0x1c1   : > { %v3499_v18 = vadd.f32 %v3377_v61, %v894_v53 }
 0x1c2   : > { %v4042_v28 = vpack.c.bf16 %v3496_v17, %v3490_v15  ;;  %v1293_v15 = vld [vmem:[%s4037_s1 + $0x158] sm:$0xff]  ;;  %v1296_v17 = vld [vmem:[%s4037_s1 + $0x170] sm:$0xff] }
 0x1c3   : > { %v2295_v22 = vpack.c.bf16 %v3499_v18, %v3493_v16  ;;  %v898_v56 = vpop.f32.mrb[80].mxu0  ;;  %v1292_v16 = vld [vmem:[%s4037_s1 + $0x150] sm:$0xff]  ;;  %v1295_v18 = vld [vmem:[%s4037_s1 + $0x168] sm:$0xff] }
 0x1c4   : > { %v3506_v23 = vadd.f32 %v3382_v2, %v898_v56  ;;  %v900_v57 = vpop.f32.mrb[81].mxu0 }
 0x1c5   : > { %v3509_v24 = vadd.f32 %v3384_v59, %v900_v57 }
 0x1c7   : > { %v904_v47 = vpop.f32.mrb[82].mxu0 }
 0x1c8   : > { %v3512_v25 = vadd.f32 %v3389_v5, %v904_v47  ;;  %v906_v61 = vpop.f32.mrb[83].mxu0 }
 0x1c9   : > { %v3515_v26 = vadd.f32 %v3391_v7, %v906_v61 }
 0x1cb   : > { %v910_v30 = vpop.f32.mrb[84].mxu0  ;;  %v4043_v34 = vpack.c.bf16 %v3515_v26, %v3509_v24  ;;  %v1302_v24 = vld [vmem:[%s4037_s1 + $0x1a0] sm:$0xff]  ;;  %v1305_v26 = vld [vmem:[%s4037_s1 + $0x1b8] sm:$0xff] }
 0x1cc   : > { %v3525_v35 = vadd.f32 %v3395_v6, %v910_v30  ;;  %v912_v5 = vpop.f32.mrb[85].mxu0 }
 0x1cd   : > { %v3528_v36 = vadd.f32 %v3397_v8, %v912_v5 }
 0x1cf   : > { %v916_v7 = vpop.f32.mrb[86].mxu0 }
 0x1d0   : > { %v3531_v39 = vadd.f32 %v3399_v10, %v916_v7  ;;  %v918_v40 = vpop.f32.mrb[87].mxu0 }
 0x1d1   : > { %v3534_v44 = vadd.f32 %v3401_v9, %v918_v40 }
 0x1d2   : > { %v4046_v49 = vpack.c.bf16 %v3531_v39, %v3525_v35  ;;  %v1304_v35 = vld [vmem:[%s4037_s1 + $0x1b0] sm:$0xff]  ;;  %v1307_v39 = vld [vmem:[%s4037_s1 + $0x1c8] sm:$0xff] }
 0x1d3   : > { %v987_v6 = vpop.f32.mrb[0].mxu0  ;;  %v4045_v43 = vpack.c.bf16 %v3534_v44, %v3528_v36  ;;  %v1308_v36 = vld [vmem:[%s4037_s1 + $0x1d0] sm:$0xff]  ;;  %v1311_v44 = vld [vmem:[%s4037_s1 + $0x1e8] sm:$0xff] }
 0x1d4   : > { %v989_v53 = vpop.f32.mrb[1].mxu0 }
 0x1d7   : > { %v993_v56 = vpop.f32.mrb[2].mxu0 }
 0x1d8   : > { %v2221_v57 = vpack.c.bf16 %v993_v56, %v987_v6  ;;  %v995_v8 = vpop.f32.mrb[3].mxu0 }
 0x1d9   : > { %v2219_v47 = vpack.c.bf16 %v995_v8, %v989_v53 }
 0x1db   : > { %v999_v61 = vpop.f32.mrb[4].mxu0  ;;  %2220 = vmatprep.subr.bf16.mxu1 %v2219_v47 }
 0x1dc   : > { %v1001_v10 = vpop.f32.mrb[5].mxu0  ;;  %2222 = vmatpush1.bf16.msra.mxu1 %v2221_v57 }
 0x1df   : > { %v1005_v29 = vpop.f32.mrb[6].mxu0 }
 0x1e0   : > { %v2225_v30 = vpack.c.bf16 %v1005_v29, %v999_v61  ;;  %v1007_v9 = vpop.f32.mrb[7].mxu0 }
 0x1e1   : > { %v2223_v5 = vpack.c.bf16 %v1007_v9, %v1001_v10 }
 0x1e3   : > { %v1011_v7 = vpop.f32.mrb[8].mxu0  ;;  %2224 = vmatprep.subr.bf16.mxu1 %v2223_v5 }
 0x1e4   : > { %v1013_v40 = vpop.f32.mrb[9].mxu0  ;;  %2226 = vmatpush1.bf16.msra.mxu1 %v2225_v30 }
 0x1e7   : > { %v1017_v46 = vpop.f32.mrb[10].mxu0 }
 0x1e8   : > { %v2229_v50 = vpack.c.bf16 %v1017_v46, %v1011_v7  ;;  %v1019_v2 = vpop.f32.mrb[11].mxu0 }
 0x1e9   : > { %v2227_v59 = vpack.c.bf16 %v1019_v2, %v1013_v40 }
 0x1eb   : > { %v1023_v20 = vpop.f32.mrb[12].mxu0  ;;  %2228 = vmatprep.subr.bf16.mxu1 %v2227_v59 }
 0x1ec   : > { %v1025_v6 = vpop.f32.mrb[13].mxu0  ;;  %2230 = vmatpush1.bf16.msra.mxu1 %v2229_v50 }
 0x1ef   : > { %v1029_v53 = vpop.f32.mrb[14].mxu0 }
 0x1f0   : > { %v2233_v56 = vpack.c.bf16 %v1029_v53, %v1023_v20  ;;  %v1031_v8 = vpop.f32.mrb[15].mxu0 }
 0x1f1   : > { %v2231_v57 = vpack.c.bf16 %v1031_v8, %v1025_v6 }
 0x1f3   : > { %v1035_v47 = vpop.f32.mrb[16].mxu0  ;;  %2232 = vmatprep.subr.bf16.mxu1 %v2231_v57 }
 0x1f4   : > { %v1037_v61 = vpop.f32.mrb[17].mxu0  ;;  %2234 = vmatpush1.bf16.msra.mxu1 %v2233_v56 }
 0x1f7   : > { %v1041_v10 = vpop.f32.mrb[18].mxu0 }
 0x1f8   : > { %v2237_v29 = vpack.c.bf16 %v1041_v10, %v1035_v47  ;;  %v1043_v9 = vpop.f32.mrb[19].mxu0 }
 0x1f9   : > { %v2235_v30 = vpack.c.bf16 %v1043_v9, %v1037_v61 }
 0x1fb   : > { %v1047_v5 = vpop.f32.mrb[20].mxu0  ;;  %2236 = vmatprep.subr.bf16.mxu1 %v2235_v30 }
 0x1fc   : > { %v1049_v46 = vpop.f32.mrb[21].mxu0  ;;  %2238 = vmatpush1.bf16.msra.mxu1 %v2237_v29 }
 0x1ff   : > { %v1053_v2 = vpop.f32.mrb[22].mxu0 }
 0x200   : > { %v2241_v59 = vpack.c.bf16 %v1053_v2, %v1047_v5  ;;  %v1055_v7 = vpop.f32.mrb[23].mxu0 }
 0x201   : > { %v2239_v50 = vpack.c.bf16 %v1055_v7, %v1049_v46 }
 0x203   : > { %v1059_v40 = vpop.f32.mrb[24].mxu0  ;;  %2240 = vmatprep.subr.bf16.mxu1 %v2239_v50 }
 0x204   : > { %v1061_v20 = vpop.f32.mrb[25].mxu0  ;;  %2242 = vmatpush1.bf16.msra.mxu1 %v2241_v59 }
 0x207   : > { %v1065_v6 = vpop.f32.mrb[26].mxu0 }
 0x208   : > { %v2245_v53 = vpack.c.bf16 %v1065_v6, %v1059_v40  ;;  %v1067_v8 = vpop.f32.mrb[27].mxu0 }
 0x209   : > { %v2243_v56 = vpack.c.bf16 %v1067_v8, %v1061_v20 }
 0x20b   : > { %v1071_v57 = vpop.f32.mrb[28].mxu0  ;;  %2244 = vmatprep.subr.bf16.mxu1 %v2243_v56 }
 0x20c   : > { %v1073_v47 = vpop.f32.mrb[29].mxu0  ;;  %2246 = vmatpush1.bf16.msra.mxu1 %v2245_v53 }
 0x20f   : > { %v1077_v61 = vpop.f32.mrb[30].mxu0 }
 0x210   : > { %v2249_v10 = vpack.c.bf16 %v1077_v61, %v1071_v57  ;;  %v1079_v9 = vpop.f32.mrb[31].mxu0 }
 0x211   : > { %v2247_v29 = vpack.c.bf16 %v1079_v9, %v1073_v47 }
 0x213   : > { %v1083_v30 = vpop.f32.mrb[32].mxu0  ;;  %2248 = vmatprep.subr.bf16.mxu1 %v2247_v29 }
 0x214   : > { %v1085_v5 = vpop.f32.mrb[33].mxu0  ;;  %2250 = vmatpush1.bf16.msra.mxu1 %v2249_v10 }
 0x217   : > { %v1089_v46 = vpop.f32.mrb[34].mxu0 }
 0x218   : > { %v2253_v2 = vpack.c.bf16 %v1089_v46, %v1083_v30  ;;  %v1091_v7 = vpop.f32.mrb[35].mxu0 }
 0x219   : > { %v2251_v59 = vpack.c.bf16 %v1091_v7, %v1085_v5 }
 0x21b   : > { %v1095_v50 = vpop.f32.mrb[36].mxu0  ;;  %2252 = vmatprep.subr.bf16.mxu1 %v2251_v59 }
 0x21c   : > { %v1097_v40 = vpop.f32.mrb[37].mxu0  ;;  %2254 = vmatpush1.bf16.msra.mxu1 %v2253_v2 }
 0x21f   : > { %v1101_v20 = vpop.f32.mrb[38].mxu0 }
 0x220   : > { %v2257_v6 = vpack.c.bf16 %v1101_v20, %v1095_v50  ;;  %v1103_v8 = vpop.f32.mrb[39].mxu0 }
 0x221   : > { %v2255_v53 = vpack.c.bf16 %v1103_v8, %v1097_v40 }
 0x223   : > { %v1107_v56 = vpop.f32.mrb[40].mxu0  ;;  %2256 = vmatprep.subr.bf16.mxu1 %v2255_v53 }
 0x224   : > { %v1109_v57 = vpop.f32.mrb[41].mxu0  ;;  %2258 = vmatpush1.bf16.msra.mxu1 %v2257_v6 }
 0x227   : > { %v1113_v47 = vpop.f32.mrb[42].mxu0 }
 0x228   : > { %v2261_v61 = vpack.c.bf16 %v1113_v47, %v1107_v56  ;;  %v1115_v9 = vpop.f32.mrb[43].mxu0 }
 0x229   : > { %v2259_v10 = vpack.c.bf16 %v1115_v9, %v1109_v57  ;;  %v1314_v9 = vld [vmem:[%s4037_s1 + $0x200] sm:$0xff] }
 0x22b   : > { %v1119_v29 = vpop.f32.mrb[44].mxu0  ;;  %2260 = vmatprep.subr.bf16.mxu1 %v2259_v10  ;;  %v1313_v10 = vld [vmem:[%s4037_s1 + $0x1f8] sm:$0xff] }
 0x22c   : > { %v1121_v30 = vpop.f32.mrb[45].mxu0  ;;  %2262 = vmatpush1.bf16.msra.mxu1 %v2261_v61  ;;  %v1310_v61 = vld [vmem:[%s4037_s1 + $0x1e0] sm:$0xff] }
 0x22f   : > { %v1125_v5 = vpop.f32.mrb[46].mxu0 }
 0x230   : > { %v2265_v46 = vpack.c.bf16 %v1125_v5, %v1119_v29  ;;  %v1127_v7 = vpop.f32.mrb[47].mxu0  ;;  %v1317_v29 = vld [vmem:[%s4037_s1 + $0x218] sm:$0xff]  ;;  %v1320_v5 = vld [vmem:[%s4037_s1 + $0x230] sm:$0xff] }
 0x231   : > { %v2263_v2 = vpack.c.bf16 %v1127_v7, %v1121_v30  ;;  %v1316_v30 = vld [vmem:[%s4037_s1 + $0x210] sm:$0xff]  ;;  %v1323_v7 = vld [vmem:[%s4037_s1 + $0x248] sm:$0xff] }
 0x233   : > { %v1131_v59 = vpop.f32.mrb[48].mxu0  ;;  %2264 = vmatprep.subr.bf16.mxu1 %v2263_v2  ;;  %v1322_v2 = vld [vmem:[%s4037_s1 + $0x240] sm:$0xff] }
 0x234   : > { %v1133_v50 = vpop.f32.mrb[49].mxu0  ;;  %2266 = vmatpush1.bf16.msra.mxu1 %v2265_v46  ;;  %v1319_v46 = vld [vmem:[%s4037_s1 + $0x228] sm:$0xff] }
 0x237   : > { %v1137_v40 = vpop.f32.mrb[50].mxu0 }
 0x238   : > { %v2269_v20 = vpack.c.bf16 %v1137_v40, %v1131_v59  ;;  %v1139_v8 = vpop.f32.mrb[51].mxu0  ;;  %v1326_v59 = vld [vmem:[%s4037_s1 + $0x260] sm:$0xff]  ;;  %v1329_v40 = vld [vmem:[%s4037_s1 + $0x278] sm:$0xff] }
 0x239   : > { %v2267_v6 = vpack.c.bf16 %v1139_v8, %v1133_v50  ;;  %v1325_v50 = vld [vmem:[%s4037_s1 + $0x258] sm:$0xff]  ;;  %v1332_v8 = vld [vmem:[%s4037_s1 + $0x290] sm:$0xff] }
 0x23b   : > { %v1143_v53 = vpop.f32.mrb[52].mxu0  ;;  %2268 = vmatprep.subr.bf16.mxu1 %v2267_v6  ;;  %v1331_v6 = vld [vmem:[%s4037_s1 + $0x288] sm:$0xff] }
 0x23c   : > { %v2273_v56 = vpack.c.bf16 %v3404_v21, %v1143_v53  ;;  %v1145_v57 = vpop.f32.mrb[53].mxu0  ;;  %2270 = vmatpush1.bf16.msra.mxu1 %v2269_v20  ;;  %v1250_v21 = vld [vmem:[%s4037_s1] sm:$0xff]  ;;  %v1328_v20 = vld [vmem:[%s4037_s1 + $0x270] sm:$0xff]  ;;  %v2590_v53 = vmov 0.0  }
 0x23d   : > { %v2271_v47 = vpack.c.bf16 %v3407_v33, %v1145_v57  ;;  %v1254_v33 = vld [vmem:[%s4037_s1 + $0x20] sm:$0xff]  ;;  %v1255_v57 = vld [vmem:[%s4037_s1 + $0x28] sm:$0xff] }
 0x23f   : > { %2272 = vmatprep.subr.bf16.mxu1 %v2271_v47  ;;  %v1258_v47 = vld [vmem:[%s4037_s1 + $0x40] sm:$0xff] }
 0x240   : > { %2274 = vmatpush1.bf16.msra.mxu1 %v2273_v56  ;;  %v1252_v56 = vld [vmem:[%s4037_s1 + $0x10] sm:$0xff] }
 0x241   : > { %2276 = vmatprep.subr.bf16.mxu1 %v2275_v27  ;;  %v1263_v27 = vld [vmem:[%s4037_s1 + $0x68] sm:$0xff] }
 0x244   : > { %2278 = vmatpush1.bf16.msra.mxu1 %v2277_v12  ;;  %v1259_v12 = vld [vmem:[%s4037_s1 + $0x48] sm:$0xff] }
 0x245   : > { %2280 = vmatprep.subr.bf16.mxu1 %v2279_v42  ;;  %v1265_v42 = vld [vmem:[%s4037_s1 + $0x78] sm:$0xff] }
 0x248   : > { %2282 = vmatpush1.bf16.msra.mxu1 %v2281_v38  ;;  %v4044_v38 = vpack.c.bf16 %v3512_v25, %v3506_v23  ;;  %v1298_v23 = vld [vmem:[%s4037_s1 + $0x180] sm:$0xff]  ;;  %v1301_v25 = vld [vmem:[%s4037_s1 + $0x198] sm:$0xff] }
 0x249   : > { %2284 = vmatprep.subr.bf16.mxu1 %v2283_v58  ;;  %v1271_v58 = vld [vmem:[%s4037_s1 + $0xa8] sm:$0xff] }
 0x24b   : > { %1491 = vmatmul.mubr.f32.vlgmr.msra.gmra.mrb[34].mxu1 %v1250_v21  ;;  %v1261_v21 = vld [vmem:[%s4037_s1 + $0x58] sm:$0xff] }
 0x24c   : > { %2286 = vmatpush1.bf16.msra.mxu1 %v2285_v55  ;;  %1496 = vmatprep.mubr.f32.mxu1 %v1254_v33  ;;  %v1272_v55 = vld [vmem:[%s4037_s1 + $0xb0] sm:$0xff] }
 0x24d   : > { %2288 = vmatprep.subr.bf16.mxu1 %v2287_v0  ;;  %v1280_v0 = vld [vmem:[%s4037_s1 + $0xf0] sm:$0xff] }
 0x24e   : > { %v1264_v33 = vld [vmem:[%s4037_s1 + $0x70] sm:$0xff] }
 0x24f   : > { %1497 = vmatmul.mubr.f32.gmra.mrb[36].mxu1 %v1253_v45  ;;  %v1267_v45 = vld [vmem:[%s4037_s1 + $0x88] sm:$0xff] }
 0x250   : > { %2290 = vmatpush1.bf16.msra.mxu1 %v2289_v4  ;;  %1502 = vmatprep.mubr.f32.mxu1 %v1257_v62  ;;  %v1281_v4 = vld [vmem:[%s4037_s1 + $0xf8] sm:$0xff]  ;;  %v1270_v62 = vld [vmem:[%s4037_s1 + $0xa0] sm:$0xff] }
 0x251   : > { %2292 = vmatprep.subr.bf16.mxu1 %v2291_v14  ;;  %v1289_v14 = vld [vmem:[%s4037_s1 + $0x138] sm:$0xff] }
 0x253   : > { %1503 = vmatmul.mubr.f32.gmra.mrb[38].mxu1 %v1256_v13  ;;  %v1273_v13 = vld [vmem:[%s4037_s1 + $0xb8] sm:$0xff] }
 0x254   : > { %2294 = vmatpush1.bf16.msra.mxu1 %v2293_v63  ;;  %1508 = vmatprep.mubr.f32.mxu1 %v1260_v11  ;;  %v1290_v63 = vld [vmem:[%s4037_s1 + $0x140] sm:$0xff]  ;;  %v1276_v11 = vld [vmem:[%s4037_s1 + $0xd0] sm:$0xff] }
 0x255   : > { %2296 = vmatprep.subr.bf16.mxu1 %v2295_v22  ;;  %v1299_v22 = vld [vmem:[%s4037_s1 + $0x188] sm:$0xff] }
 0x257   : > { %1509 = vmatmul.mubr.f32.gmra.mrb[40].mxu1 %v1259_v12  ;;  %v1279_v12 = vld [vmem:[%s4037_s1 + $0xe8] sm:$0xff] }
 0x258   : > { %2298 = vmatpush1.bf16.msra.mxu1 %v4042_v28  ;;  %1514 = vmatprep.mubr.f32.mxu1 %v1263_v27  ;;  %v1282_v27 = vld [vmem:[%s4037_s1 + $0x100] sm:$0xff]  ;;  %v1285_v28 = vld [vmem:[%s4037_s1 + $0x118] sm:$0xff] }
 0x259   : > { %2300 = vmatprep.subr.bf16.mxu1 %v4043_v34  ;;  %v1291_v34 = vld [vmem:[%s4037_s1 + $0x148] sm:$0xff] }
 0x25b   : > { %1515 = vmatmul.mubr.f32.gmra.mrb[42].mxu1 %v1262_v31  ;;  %v1288_v31 = vld [vmem:[%s4037_s1 + $0x130] sm:$0xff] }
 0x25c   : > { %2302 = vmatpush1.bf16.msra.mxu1 %v4044_v38  ;;  %1520 = vmatprep.mubr.f32.mxu1 %v1266_v37  ;;  %v1294_v37 = vld [vmem:[%s4037_s1 + $0x160] sm:$0xff]  ;;  %v1297_v38 = vld [vmem:[%s4037_s1 + $0x178] sm:$0xff] }
 0x25d   : > { %2305 = vmatprep.subr.msk.bf16.mxu1 %vm2304_vm3, %v4045_v43  ;;  %v1303_v43 = vld [vmem:[%s4037_s1 + $0x1a8] sm:$0xff] }
 0x25f   : > { %1521 = vmatmul.mubr.f32.gmra.mrb[44].mxu1 %v1265_v42  ;;  %v1300_v42 = vld [vmem:[%s4037_s1 + $0x190] sm:$0xff] }
 0x260   : > { %2308 = vmatpush1.bf16.msk.msra.mxu1 %vm2304_vm3, %v4046_v49  ;;  %1526 = vmatprep.mubr.f32.mxu1 %v1269_v48  ;;  %v1306_v48 = vld [vmem:[%s4037_s1 + $0x1c0] sm:$0xff]  ;;  %v1309_v49 = vld [vmem:[%s4037_s1 + $0x1d8] sm:$0xff] }
 0x263   : > { %1527 = vmatmul.mubr.f32.gmra.mrb[46].mxu1 %v1268_v54  ;;  %v1312_v54 = vld [vmem:[%s4037_s1 + $0x1f0] sm:$0xff] }
 0x264   : > { %1532 = vmatprep.mubr.f32.mxu1 %v1272_v55  ;;  %v1315_v55 = vld [vmem:[%s4037_s1 + $0x208] sm:$0xff] }
 0x267   : > { %1533 = vmatmul.mubr.f32.gmra.mrb[48].mxu1 %v1271_v58  ;;  %v1318_v58 = vld [vmem:[%s4037_s1 + $0x220] sm:$0xff] }
 0x268   : > { %1538 = vmatprep.mubr.f32.mxu1 %v1275_v60  ;;  %v1321_v60 = vld [vmem:[%s4037_s1 + $0x238] sm:$0xff] }
 0x26b   : > { %1539 = vmatmul.mubr.f32.gmra.mrb[50].mxu1 %v1274_v51  ;;  %v1324_v51 = vld [vmem:[%s4037_s1 + $0x250] sm:$0xff] }
 0x26c   : > { %1544 = vmatprep.mubr.f32.mxu1 %v1278_v1  ;;  %v1327_v1 = vld [vmem:[%s4037_s1 + $0x268] sm:$0xff] }
 0x26f   : > { %1545 = vmatmul.mubr.f32.gmra.mrb[52].mxu1 %v1277_v3  ;;  %v1330_v3 = vld [vmem:[%s4037_s1 + $0x280] sm:$0xff] }
 0x270   : > { %1550 = vmatprep.mubr.f32.mxu1 %v1281_v4  ;;  %v1333_v4 = vld [vmem:[%s4037_s1 + $0x298] sm:$0xff] }
 0x273   : > { %1551 = vmatmul.mubr.f32.gmra.mrb[54].mxu1 %v1280_v0 }
 0x274   : > { %1556 = vmatprep.mubr.f32.mxu1 %v1284_v19 }
 0x277   : > { %1557 = vmatmul.mubr.f32.gmra.mrb[56].mxu1 %v1283_v32 }
 0x278   : > { %1562 = vmatprep.mubr.f32.mxu1 %v1287_v41 }
 0x27b   : > { %1563 = vmatmul.mubr.f32.gmra.mrb[58].mxu1 %v1286_v52 }
 0x27c   : > { %1568 = vmatprep.mubr.f32.mxu1 %v1290_v63 }
 0x27f   : > { %1569 = vmatmul.mubr.f32.gmra.mrb[60].mxu1 %v1289_v14 }
 0x280   : > { %1574 = vmatprep.mubr.f32.mxu1 %v1293_v15 }
 0x283   : > { %1575 = vmatmul.mubr.f32.gmra.mrb[62].mxu1 %v1292_v16 }
 0x284   : > { %1580 = vmatprep.mubr.f32.mxu1 %v1296_v17 }
 0x287   : > { %1581 = vmatmul.mubr.f32.gmra.mrb[64].mxu1 %v1295_v18 }
 0x288   : > { %1586 = vmatprep.mubr.f32.mxu1 %v1299_v22 }
 0x28b   : > { %1587 = vmatmul.mubr.f32.gmra.mrb[66].mxu1 %v1298_v23 }
 0x28c   : > { %1592 = vmatprep.mubr.f32.mxu1 %v1302_v24 }
 0x28f   : > { %1593 = vmatmul.mubr.f32.gmra.mrb[68].mxu1 %v1301_v25 }
 0x290   : > { %1598 = vmatprep.mubr.f32.mxu1 %v1305_v26 }
 0x293   : > { %1599 = vmatmul.mubr.f32.gmra.mrb[70].mxu1 %v1304_v35 }
 0x294   : > { %1604 = vmatprep.mubr.f32.mxu1 %v1308_v36 }
 0x297   : > { %1605 = vmatmul.mubr.f32.gmra.mrb[72].mxu1 %v1307_v39 }
 0x298   : > { %1610 = vmatprep.mubr.f32.mxu1 %v1311_v44 }
 0x29b   : > { %1611 = vmatmul.mubr.f32.gmra.mrb[74].mxu1 %v1310_v61 }
 0x29c   : > { %1616 = vmatprep.mubr.f32.mxu1 %v1314_v9 }
 0x29f   : > { %1617 = vmatmul.mubr.f32.gmra.mrb[76].mxu1 %v1313_v10 }
 0x2a0   : > { %1622 = vmatprep.mubr.f32.mxu1 %v1317_v29 }
 0x2a3   : > { %1623 = vmatmul.mubr.f32.gmra.mrb[78].mxu1 %v1316_v30 }
 0x2a4   : > { %1628 = vmatprep.mubr.f32.mxu1 %v1320_v5 }
 0x2a7   : > { %1629 = vmatmul.mubr.f32.gmra.mrb[80].mxu1 %v1319_v46 }
 0x2a8   : > { %1634 = vmatprep.mubr.f32.mxu1 %v1323_v7 }
 0x2ab   : > { %1635 = vmatmul.mubr.f32.gmra.mrb[82].mxu1 %v1322_v2 }
 0x2ac   : > { %1640 = vmatprep.mubr.f32.mxu1 %v1326_v59 }
 0x2af   : > { %1641 = vmatmul.mubr.f32.gmra.mrb[84].mxu1 %v1325_v50 }
 0x2b0   : > { %1646 = vmatprep.mubr.f32.mxu1 %v1329_v40 }
 0x2b3   : > { %1647 = vmatmul.mubr.f32.gmra.mrb[86].mxu1 %v1328_v20 }
 0x2b4   : > { %1652 = vmatprep.mubr.f32.mxu1 %v1332_v8 }
 0x2b7   : > { %1653 = vmatmul.mubr.f32.gmra.mrb[88].mxu1 %v1331_v6 }
 0x2b8   : > { %1723 = vmatprep.mubr.f32.mxu1 %v2590_v53 }
 0x2bb   : > { %2076 = vmatmul.mubr.msk.f32.vlgmr.msra.gmra.mrb[34].mxu1 %vm1334_vm4, %v1252_v56 }
 0x2bc   : > { %1729 = vmatprep.mubr.f32.mxu1 %v2590_v53 }
 0x2bf   : > { %2077 = vmatmul.mubr.msk.f32.gmra.mrb[36].mxu1 %vm1334_vm4, %v1255_v57 }
 0x2c0   : > { %1735 = vmatprep.mubr.f32.mxu1 %v2590_v53 }
 0x2c3   : > { %2078 = vmatmul.mubr.msk.f32.gmra.mrb[38].mxu1 %vm1334_vm4, %v1258_v47 }
 0x2c4   : > { %1741 = vmatprep.mubr.f32.mxu1 %v2590_v53 }
 0x2c7   : > { %2079 = vmatmul.mubr.msk.f32.gmra.mrb[40].mxu1 %vm1334_vm4, %v1261_v21 }
 0x2c8   : > { %1747 = vmatprep.mubr.f32.mxu1 %v2590_v53 }
 0x2cb   : > { %2080 = vmatmul.mubr.msk.f32.gmra.mrb[42].mxu1 %vm1334_vm4, %v1264_v33 }
 0x2cc   : > { %1753 = vmatprep.mubr.f32.mxu1 %v2590_v53 }
 0x2cf   : > { %2081 = vmatmul.mubr.msk.f32.gmra.mrb[44].mxu1 %vm1334_vm4, %v1267_v45 }
 0x2d0   : > { %1759 = vmatprep.mubr.f32.mxu1 %v2590_v53 }
 0x2d3   : > { %2082 = vmatmul.mubr.msk.f32.gmra.mrb[46].mxu1 %vm1334_vm4, %v1270_v62 }
 0x2d4   : > { %1765 = vmatprep.mubr.f32.mxu1 %v2590_v53 }
 0x2d7   : > { %2083 = vmatmul.mubr.msk.f32.gmra.mrb[48].mxu1 %vm1334_vm4, %v1273_v13 }
 0x2d8   : > { %1771 = vmatprep.mubr.f32.mxu1 %v2590_v53 }
 0x2db   : > { %2084 = vmatmul.mubr.msk.f32.gmra.mrb[50].mxu1 %vm1334_vm4, %v1276_v11 }
 0x2dc   : > { %1777 = vmatprep.mubr.f32.mxu1 %v2590_v53 }
 0x2df   : > { %2085 = vmatmul.mubr.msk.f32.gmra.mrb[52].mxu1 %vm1334_vm4, %v1279_v12 }
 0x2e0   : > { %1783 = vmatprep.mubr.f32.mxu1 %v2590_v53 }
 0x2e3   : > { %2086 = vmatmul.mubr.msk.f32.gmra.mrb[54].mxu1 %vm1334_vm4, %v1282_v27 }
 0x2e4   : > { %1789 = vmatprep.mubr.f32.mxu1 %v2590_v53 }
 0x2e7   : > { %2087 = vmatmul.mubr.msk.f32.gmra.mrb[56].mxu1 %vm1334_vm4, %v1285_v28 }
 0x2e8   : > { %1795 = vmatprep.mubr.f32.mxu1 %v2590_v53 }
 0x2eb   : > { %2088 = vmatmul.mubr.msk.f32.gmra.mrb[58].mxu1 %vm1334_vm4, %v1288_v31 }
 0x2ec   : > { %1801 = vmatprep.mubr.f32.mxu1 %v2590_v53 }
 0x2ef   : > { %2089 = vmatmul.mubr.msk.f32.gmra.mrb[60].mxu1 %vm1334_vm4, %v1291_v34 }
 0x2f0   : > { %1807 = vmatprep.mubr.f32.mxu1 %v2590_v53 }
 0x2f3   : > { %2090 = vmatmul.mubr.msk.f32.gmra.mrb[62].mxu1 %vm1334_vm4, %v1294_v37 }
 0x2f4   : > { %1813 = vmatprep.mubr.f32.mxu1 %v2590_v53 }
 0x2f7   : > { %2091 = vmatmul.mubr.msk.f32.gmra.mrb[64].mxu1 %vm1334_vm4, %v1297_v38 }
 0x2f8   : > { %1819 = vmatprep.mubr.f32.mxu1 %v2590_v53 }
 0x2fb   : > { %2092 = vmatmul.mubr.msk.f32.gmra.mrb[66].mxu1 %vm1334_vm4, %v1300_v42 }
 0x2fc   : > { %1825 = vmatprep.mubr.f32.mxu1 %v2590_v53 }
 0x2ff   : > { %2093 = vmatmul.mubr.msk.f32.gmra.mrb[68].mxu1 %vm1334_vm4, %v1303_v43 }
 0x300   : > { %1831 = vmatprep.mubr.f32.mxu1 %v2590_v53 }
 0x303   : > { %2094 = vmatmul.mubr.msk.f32.gmra.mrb[70].mxu1 %vm1334_vm4, %v1306_v48 }
 0x304   : > { %1837 = vmatprep.mubr.f32.mxu1 %v2590_v53 }
 0x307   : > { %2095 = vmatmul.mubr.msk.f32.gmra.mrb[72].mxu1 %vm1334_vm4, %v1309_v49 }
 0x308   : > { %1843 = vmatprep.mubr.f32.mxu1 %v2590_v53 }
 0x30b   : > { %2096 = vmatmul.mubr.msk.f32.gmra.mrb[74].mxu1 %vm1334_vm4, %v1312_v54 }
 0x30c   : > { %1849 = vmatprep.mubr.f32.mxu1 %v2590_v53 }
 0x30f   : > { %2097 = vmatmul.mubr.msk.f32.gmra.mrb[76].mxu1 %vm1334_vm4, %v1315_v55 }
 0x310   : > { %1855 = vmatprep.mubr.f32.mxu1 %v2590_v53 }
 0x313   : > { %2098 = vmatmul.mubr.msk.f32.gmra.mrb[78].mxu1 %vm1334_vm4, %v1318_v58 }
 0x314   : > { %1861 = vmatprep.mubr.f32.mxu1 %v2590_v53 }
 0x317   : > { %2099 = vmatmul.mubr.msk.f32.gmra.mrb[80].mxu1 %vm1334_vm4, %v1321_v60 }
 0x318   : > { %1867 = vmatprep.mubr.f32.mxu1 %v2590_v53 }
 0x31b   : > { %2100 = vmatmul.mubr.msk.f32.gmra.mrb[82].mxu1 %vm1334_vm4, %v1324_v51 }
 0x31c   : > { %1873 = vmatprep.mubr.f32.mxu1 %v2590_v53 }
 0x31f   : > { %2101 = vmatmul.mubr.msk.f32.gmra.mrb[84].mxu1 %vm1334_vm4, %v1327_v1 }
 0x320   : > { %1879 = vmatprep.mubr.f32.mxu1 %v2590_v53 }
 0x323   : > { %2102 = vmatmul.mubr.msk.f32.gmra.mrb[86].mxu1 %vm1334_vm4, %v1330_v3 }
 0x324   : > { %1885 = vmatprep.mubr.f32.mxu1 %v2590_v53 }
 0x327   : > { %2103 = vmatmul.mubr.msk.f32.gmra.mrb[88].mxu1 %vm1334_vm4, %v1333_v4 }
 0x38e   : > { %v1725_v0 = vpop.f32.mrb[34].mxu1 }
 0x38f   : > { %1892 = vst [vmem:[%s3898_s19] sm:$0xff] %v1725_v0  ;;  %v1727_v19 = vpop.f32.mrb[35].mxu1 }
 0x390   : > { %1894 = vst.msk [vmem:[%s3898_s19 + $0x8] sm:$0xff] %vm1893_vm5, %v1727_v19 }
 0x392   : > { %v1731_v32 = vpop.f32.mrb[36].mxu1 }
 0x393   : > { %1895 = vst [vmem:[%s3898_s19 + $0x10] sm:$0xff] %v1731_v32  ;;  %v1733_v41 = vpop.f32.mrb[37].mxu1 }
 0x394   : > { %1896 = vst.msk [vmem:[%s3898_s19 + $0x18] sm:$0xff] %vm1893_vm5, %v1733_v41 }
 0x396   : > { %v1737_v52 = vpop.f32.mrb[38].mxu1 }
 0x397   : > { %1897 = vst [vmem:[%s3898_s19 + $0x20] sm:$0xff] %v1737_v52  ;;  %v1739_v63 = vpop.f32.mrb[39].mxu1 }
 0x398   : > { %1898 = vst.msk [vmem:[%s3898_s19 + $0x28] sm:$0xff] %vm1893_vm5, %v1739_v63 }
 0x39a   : > { %v1743_v14 = vpop.f32.mrb[40].mxu1 }
 0x39b   : > { %1899 = vst [vmem:[%s3898_s19 + $0x30] sm:$0xff] %v1743_v14  ;;  %v1745_v15 = vpop.f32.mrb[41].mxu1 }
 0x39c   : > { %1900 = vst.msk [vmem:[%s3898_s19 + $0x38] sm:$0xff] %vm1893_vm5, %v1745_v15 }
 0x39e   : > { %v1749_v16 = vpop.f32.mrb[42].mxu1 }
 0x39f   : > { %1901 = vst [vmem:[%s3898_s19 + $0x40] sm:$0xff] %v1749_v16  ;;  %v1751_v17 = vpop.f32.mrb[43].mxu1 }
 0x3a0   : > { %1902 = vst.msk [vmem:[%s3898_s19 + $0x48] sm:$0xff] %vm1893_vm5, %v1751_v17 }
 0x3a2   : > { %v1755_v18 = vpop.f32.mrb[44].mxu1 }
 0x3a3   : > { %1903 = vst [vmem:[%s3898_s19 + $0x50] sm:$0xff] %v1755_v18  ;;  %v1757_v22 = vpop.f32.mrb[45].mxu1 }
 0x3a4   : > { %1904 = vst.msk [vmem:[%s3898_s19 + $0x58] sm:$0xff] %vm1893_vm5, %v1757_v22 }
 0x3a6   : > { %v1761_v23 = vpop.f32.mrb[46].mxu1 }
 0x3a7   : > { %1905 = vst [vmem:[%s3898_s19 + $0x60] sm:$0xff] %v1761_v23  ;;  %v1763_v24 = vpop.f32.mrb[47].mxu1 }
 0x3a8   : > { %1906 = vst.msk [vmem:[%s3898_s19 + $0x68] sm:$0xff] %vm1893_vm5, %v1763_v24 }
 0x3aa   : > { %v1767_v25 = vpop.f32.mrb[48].mxu1 }
 0x3ab   : > { %1907 = vst [vmem:[%s3898_s19 + $0x70] sm:$0xff] %v1767_v25  ;;  %v1769_v26 = vpop.f32.mrb[49].mxu1 }
 0x3ac   : > { %1908 = vst.msk [vmem:[%s3898_s19 + $0x78] sm:$0xff] %vm1893_vm5, %v1769_v26 }
 0x3ae   : > { %v1773_v35 = vpop.f32.mrb[50].mxu1 }
 0x3af   : > { %1909 = vst [vmem:[%s3898_s19 + $0x80] sm:$0xff] %v1773_v35  ;;  %v1775_v36 = vpop.f32.mrb[51].mxu1 }
 0x3b0   : > { %1910 = vst.msk [vmem:[%s3898_s19 + $0x88] sm:$0xff] %vm1893_vm5, %v1775_v36 }
 0x3b2   : > { %v1779_v39 = vpop.f32.mrb[52].mxu1 }
 0x3b3   : > { %1911 = vst [vmem:[%s3898_s19 + $0x90] sm:$0xff] %v1779_v39  ;;  %v1781_v44 = vpop.f32.mrb[53].mxu1 }
 0x3b4   : > { %1912 = vst.msk [vmem:[%s3898_s19 + $0x98] sm:$0xff] %vm1893_vm5, %v1781_v44 }
 0x3b6   : > { %v1785_v61 = vpop.f32.mrb[54].mxu1 }
 0x3b7   : > { %1913 = vst [vmem:[%s3898_s19 + $0xa0] sm:$0xff] %v1785_v61  ;;  %v1787_v9 = vpop.f32.mrb[55].mxu1 }
 0x3b8   : > { %1914 = vst.msk [vmem:[%s3898_s19 + $0xa8] sm:$0xff] %vm1893_vm5, %v1787_v9 }
 0x3ba   : > { %v1791_v10 = vpop.f32.mrb[56].mxu1 }
 0x3bb   : > { %1915 = vst [vmem:[%s3898_s19 + $0xb0] sm:$0xff] %v1791_v10  ;;  %v1793_v29 = vpop.f32.mrb[57].mxu1 }
 0x3bc   : > { %1916 = vst.msk [vmem:[%s3898_s19 + $0xb8] sm:$0xff] %vm1893_vm5, %v1793_v29 }
 0x3be   : > { %v1797_v30 = vpop.f32.mrb[58].mxu1 }
 0x3bf   : > { %1917 = vst [vmem:[%s3898_s19 + $0xc0] sm:$0xff] %v1797_v30  ;;  %v1799_v5 = vpop.f32.mrb[59].mxu1 }
 0x3c0   : > { %1918 = vst.msk [vmem:[%s3898_s19 + $0xc8] sm:$0xff] %vm1893_vm5, %v1799_v5 }
 0x3c2   : > { %v1803_v46 = vpop.f32.mrb[60].mxu1 }
 0x3c3   : > { %1919 = vst [vmem:[%s3898_s19 + $0xd0] sm:$0xff] %v1803_v46  ;;  %v1805_v7 = vpop.f32.mrb[61].mxu1 }
 0x3c4   : > { %1920 = vst.msk [vmem:[%s3898_s19 + $0xd8] sm:$0xff] %vm1893_vm5, %v1805_v7 }
 0x3c6   : > { %v1809_v2 = vpop.f32.mrb[62].mxu1 }
 0x3c7   : > { %1921 = vst [vmem:[%s3898_s19 + $0xe0] sm:$0xff] %v1809_v2  ;;  %v1811_v59 = vpop.f32.mrb[63].mxu1 }
 0x3c8   : > { %1922 = vst.msk [vmem:[%s3898_s19 + $0xe8] sm:$0xff] %vm1893_vm5, %v1811_v59 }
 0x3ca   : > { %v1815_v50 = vpop.f32.mrb[64].mxu1 }
 0x3cb   : > { %1923 = vst [vmem:[%s3898_s19 + $0xf0] sm:$0xff] %v1815_v50  ;;  %v1817_v40 = vpop.f32.mrb[65].mxu1 }
 0x3cc   : > { %1924 = vst.msk [vmem:[%s3898_s19 + $0xf8] sm:$0xff] %vm1893_vm5, %v1817_v40 }
 0x3ce   : > { %v1821_v20 = vpop.f32.mrb[66].mxu1 }
 0x3cf   : > { %1925 = vst [vmem:[%s3898_s19 + $0x100] sm:$0xff] %v1821_v20  ;;  %v1823_v8 = vpop.f32.mrb[67].mxu1 }
 0x3d0   : > { %1926 = vst.msk [vmem:[%s3898_s19 + $0x108] sm:$0xff] %vm1893_vm5, %v1823_v8 }
 0x3d2   : > { %v1827_v6 = vpop.f32.mrb[68].mxu1 }
 0x3d3   : > { %1927 = vst [vmem:[%s3898_s19 + $0x110] sm:$0xff] %v1827_v6  ;;  %v1829_v53 = vpop.f32.mrb[69].mxu1 }
 0x3d4   : > { %1928 = vst.msk [vmem:[%s3898_s19 + $0x118] sm:$0xff] %vm1893_vm5, %v1829_v53 }
 0x3d6   : > { %v1833_v56 = vpop.f32.mrb[70].mxu1 }
 0x3d7   : > { %1929 = vst [vmem:[%s3898_s19 + $0x120] sm:$0xff] %v1833_v56  ;;  %v1835_v57 = vpop.f32.mrb[71].mxu1 }
 0x3d8   : > { %1930 = vst.msk [vmem:[%s3898_s19 + $0x128] sm:$0xff] %vm1893_vm5, %v1835_v57 }
 0x3da   : > { %v1839_v47 = vpop.f32.mrb[72].mxu1 }
 0x3db   : > { %1931 = vst [vmem:[%s3898_s19 + $0x130] sm:$0xff] %v1839_v47  ;;  %v1841_v21 = vpop.f32.mrb[73].mxu1 }
 0x3dc   : > { %1932 = vst.msk [vmem:[%s3898_s19 + $0x138] sm:$0xff] %vm1893_vm5, %v1841_v21 }
 0x3de   : > { %v1845_v33 = vpop.f32.mrb[74].mxu1 }
 0x3df   : > { %1933 = vst [vmem:[%s3898_s19 + $0x140] sm:$0xff] %v1845_v33  ;;  %v1847_v45 = vpop.f32.mrb[75].mxu1 }
 0x3e0   : > { %1934 = vst.msk [vmem:[%s3898_s19 + $0x148] sm:$0xff] %vm1893_vm5, %v1847_v45 }
 0x3e2   : > { %v1851_v62 = vpop.f32.mrb[76].mxu1 }
 0x3e3   : > { %1935 = vst [vmem:[%s3898_s19 + $0x150] sm:$0xff] %v1851_v62  ;;  %v1853_v13 = vpop.f32.mrb[77].mxu1 }
 0x3e4   : > { %1936 = vst.msk [vmem:[%s3898_s19 + $0x158] sm:$0xff] %vm1893_vm5, %v1853_v13 }
 0x3e6   : > { %v1857_v11 = vpop.f32.mrb[78].mxu1 }
 0x3e7   : > { %1937 = vst [vmem:[%s3898_s19 + $0x160] sm:$0xff] %v1857_v11  ;;  %v1859_v12 = vpop.f32.mrb[79].mxu1 }
 0x3e8   : > { %1938 = vst.msk [vmem:[%s3898_s19 + $0x168] sm:$0xff] %vm1893_vm5, %v1859_v12 }
 0x3ea   : > { %v1863_v27 = vpop.f32.mrb[80].mxu1 }
 0x3eb   : > { %1939 = vst [vmem:[%s3898_s19 + $0x170] sm:$0xff] %v1863_v27  ;;  %v1865_v28 = vpop.f32.mrb[81].mxu1 }
 0x3ec   : > { %1940 = vst.msk [vmem:[%s3898_s19 + $0x178] sm:$0xff] %vm1893_vm5, %v1865_v28 }
 0x3ee   : > { %v1869_v31 = vpop.f32.mrb[82].mxu1 }
 0x3ef   : > { %1941 = vst [vmem:[%s3898_s19 + $0x180] sm:$0xff] %v1869_v31  ;;  %v1871_v34 = vpop.f32.mrb[83].mxu1 }
 0x3f0   : > { %1942 = vst.msk [vmem:[%s3898_s19 + $0x188] sm:$0xff] %vm1893_vm5, %v1871_v34 }
 0x3f2   : > { %v1875_v37 = vpop.f32.mrb[84].mxu1 }
 0x3f3   : > { %1943 = vst [vmem:[%s3898_s19 + $0x190] sm:$0xff] %v1875_v37  ;;  %v1877_v38 = vpop.f32.mrb[85].mxu1 }
 0x3f4   : > { %1944 = vst.msk [vmem:[%s3898_s19 + $0x198] sm:$0xff] %vm1893_vm5, %v1877_v38 }
 0x3f6   : > { %v1881_v42 = vpop.f32.mrb[86].mxu1 }
 0x3f7   : > { %1945 = vst [vmem:[%s3898_s19 + $0x1a0] sm:$0xff] %v1881_v42  ;;  %v1883_v43 = vpop.f32.mrb[87].mxu1 }
 0x3f8   : > { %1946 = vst.msk [vmem:[%s3898_s19 + $0x1a8] sm:$0xff] %vm1893_vm5, %v1883_v43 }
 0x3fa   : > { %v1887_v48 = vpop.f32.mrb[88].mxu1 }
 0x3fb   : > { %1947 = vst [vmem:[%s3898_s19 + $0x1b0] sm:$0xff] %v1887_v48  ;;  %v1889_v49 = vpop.f32.mrb[89].mxu1 }
 0x3fc   : > { %1948 = vst.msk [vmem:[%s3898_s19 + $0x1b8] sm:$0xff] %vm1893_vm5, %v1889_v49 }
 0x3fd   : > { %2538 = shalt.err (!%p2535_p3)
}
 0x3fe   : > { %s2539_s26 = scalar_lea.hbm %s3986_s28, 7168  ;;  %s2543_s8 = scalar_lea.hbm %s4039_s3, 21504 }
 0x3ff   : > { %p2540_p4 = scmp.ne.s32.totalorder %s3986_s28, %s2539_s26  ;;  %p2544_p9 = scmp.lt.u32.totalorder %s3986_s28, %s4039_s3 }
 0x400   : > { %p2545_p10 = scmp.lt.u32.totalorder %s2543_s8, %s2539_s26  ;;  %p2547_p12 = scmp.lt.u32.totalorder %s2539_s26, %s3986_s28 }
 0x401   : > { %p2541_p7 = pnand %p2540_p4, %p2652_p5 }
 0x402   : > { %p2546_p11 = por %p2545_p10, %p2544_p9 }
 0x403   : > { %p2542_p8 = pneg %p2541_p7 }
 0x404   : > { %p2548_p13 = por %p2547_p12, %p2546_p11 }
 0x406   : > { %p2549_p0 = pnand %p2548_p13, %p2542_p8 }
 0x408   : > { %2552 = shalt.err (!%p2549_p0)
}
 0x409   : > { %s2592_s11 = smov 256   ;;  %s2593_s17 = smov 16  }
 0x40a   : > { %2482 = dma.vmem_to_hbm [thread:$0]  (%p2652_p5), %s3988_s24, 7168, %s3986_s28, %s3995_s16, %s2592_s11, %s2592_s11, %s2593_s17  }
 0x40b PF: > { %p2488_p1 = scmp.ge.s32.totalorder %s2587_s15, 2  ;;  %s1978_s19 = sand.u32 1, %s2575_s12  }
 0x40c   : > { %s1979_s20 = scalar_lea.sflag [#allocation3], %s1978_s19 }
 0x40d   : > { %p2485_p2 = pnand %p2488_p1, %p2656_p6 }
 0x40f   : > { %2570 = dma.done.wait (!%p2485_p2), %s1979_s20, 7168  }
 0x410   : > { %2572 = vsyncadd (!%p2485_p2), %s1979_s20, 4294960128  ;;  %p13_p3 = scmp.ge.s32.totalorder %s2639_s18, 5   ;;  %s4047_s12 = smov %s2579_s13 }
 0x411   : > { %s4048_s13 = smov %s2583_s14  ;;  %s4049_s14 = smov %s2650_s21 }
 0x412   : > { %s4050_s15 = smov %s2639_s18  ;;  %15 = sbr.rel (!%p13_p3) target bundleno = 3 (0x3), region = 67 }
 0x419   :  { %1984 = vsyncpa [#allocation3], 1 }
 0x41a   :  { %1986 = vsyncpa [#allocation3 + $0x1], 1 }

</bundles_post_ra>
